<compile_context>
chip_gen: v5e
topology: v5e:2x2
jax: 0.10.0
libtpu: 0.0.40
codegen_flags: <defaults>
</compile_context>

<pallas_src>
import functools

import jax
import jax.numpy as jnp
from jax.experimental import pallas as pl
from jax.experimental.pallas import tpu as pltpu

_PAD = 128  # lane halo on each side of the flattened image (128-aligned, >= W+1)


# ----------------------------- kernel helpers ------------------------------ #
def _make_col_masks(H, W):
    """Column-validity masks for horizontal taps ox in {-1,+1}; shape (1, H*W)."""
    ww = jax.lax.broadcasted_iota(jnp.int32, (1, H * W), 1) % W
    return {-1: ww >= 1, 0: None, 1: ww <= W - 2}


def _conv3x3_flat(v, w_ref, xpad_ref, patch_ref, col_masks, H, W):
    """3x3 / stride 1 / zero-'same'-pad / no-bias conv in (C, H*W) layout.

    v:         (Cin, H*W) f32 value (channels in sublanes, spatial in lanes)
    w_ref:     (Cout, 9*Cin) weight ref, tap-major (see _flatten_conv_weight)
    xpad_ref:  (Cin, H*W + 2*_PAD) VMEM scratch whose halo lanes are already zero
    patch_ref: (9*Cin, H*W) VMEM scratch holding the im2col patch matrix
    Returns (Cout, H*W) f32.
    """
    HW = H * W
    cin = v.shape[0]
    xpad_ref[:, _PAD:_PAD + HW] = v.astype(jnp.float32)
    t = 0
    for oy in (-1, 0, 1):
        for ox in (-1, 0, 1):
            s = oy * W + ox
            # shifted[p] == v[p + s]; vertical over/under-flow lands in the zero halo.
            shifted = xpad_ref[:, _PAD + s:_PAD + s + HW]
            mask = col_masks[ox]
            if mask is not None:  # mask column wrap-around at row edges
                shifted = jnp.where(mask, shifted, 0.0)
            patch_ref[t * cin:(t + 1) * cin, :] = shifted
            t += 1
    # Single MXU contraction with a 256-lane-wide result dimension.
    return jnp.dot(w_ref[...], patch_ref[...], preferred_element_type=jnp.float32)


def _block_mapping(v, w1_ref, w2_ref, xpad_ref, patch_ref, col_masks, H, W):
    """One block: tanh(conv2(relu(conv1(v)))); intermediate stays in VMEM/vregs."""
    h = jnp.maximum(
        _conv3x3_flat(v, w1_ref, xpad_ref, patch_ref, col_masks, H, W), 0.0)
    return jnp.tanh(
        _conv3x3_flat(h, w2_ref, xpad_ref, patch_ref, col_masks, H, W))


# --------------------------------- kernels --------------------------------- #
def _coupled_forward_kernel(x_ref, w0a_ref, w0b_ref, w1a_ref, w1b_ref, o_ref,
                            xpad_ref, patch_ref, *, H, W, C_half):
    """Two-block branch: x1,x2 = chunk(x); y1 = x1 + b0(x2); y2 = x2 + b1(y1)."""
    HW = H * W
    xpad_ref[:, :_PAD] = jnp.zeros((C_half, _PAD), jnp.float32)
    xpad_ref[:, _PAD + HW:] = jnp.zeros((C_half, _PAD), jnp.float32)
    col_masks = _make_col_masks(H, W)

    x1 = x_ref[0, :C_half, :]
    x2 = x_ref[0, C_half:, :]

    y1 = x1 + _block_mapping(x2, w0a_ref, w0b_ref, xpad_ref, patch_ref,
                             col_masks, H, W)
    y2 = x2 + _block_mapping(y1, w1a_ref, w1b_ref, xpad_ref, patch_ref,
                             col_masks, H, W)

    o_ref[0, :C_half, :] = y1.astype(o_ref.dtype)
    o_ref[0, C_half:, :] = y2.astype(o_ref.dtype)


def _single_forward_kernel(x_ref, wa_ref, wb_ref, o_ref, xpad_ref, patch_ref,
                           *, H, W, C):
    """One-block branch: y = x + block(x)."""
    HW = H * W
    xpad_ref[:, :_PAD] = jnp.zeros((C, _PAD), jnp.float32)
    xpad_ref[:, _PAD + HW:] = jnp.zeros((C, _PAD), jnp.float32)
    col_masks = _make_col_masks(H, W)

    x = x_ref[0]
    y = x + _block_mapping(x, wa_ref, wb_ref, xpad_ref, patch_ref, col_masks, H, W)
    o_ref[0] = y.astype(o_ref.dtype)


# --------------------------------- wrapper --------------------------------- #
def _flatten_conv_weight(w):
    """(Cout, Cin, 3, 3) PyTorch layout -> (Cout, 9*Cin), tap-major ((dy,dx) row
    major) to match the patch row order built in _conv3x3_flat."""
    cout, cin, kh, kw = w.shape
    assert (kh, kw) == (3, 3)
    return jnp.transpose(w, (0, 2, 3, 1)).reshape(cout, kh * kw * cin)


def forward_block_model_forward(x_nchw, blocks):
    """Pallas equivalent of forward_block_model.forward.

    blocks: list of 1 or 2 (w_conv1, w_conv2) tuples (PyTorch (Cout,Cin,3,3)
    layout); each block computes tanh(conv2(relu(conv1(.)))).
    """
    N, C, H, W = x_nchw.shape
    HW = H * W
    # TODO(synk): for large H/W add halo-based spatial tiling (and re-size tiles
    # for v7x's smaller VMEM); the whole-image-per-step block only works for
    # small images like the 16x16 test case.
    assert W + 1 <= _PAD
    x_flat = x_nchw.reshape(N, C, HW)  # free: NCHW is already (C, H*W)-contiguous

    common = dict(
        out_shape=jax.ShapeDtypeStruct((N, C, HW), x_nchw.dtype),
        grid=(N,),
        out_specs=pl.BlockSpec((1, C, HW), lambda b: (b, 0, 0)),
        compiler_params=pltpu.CompilerParams(dimension_semantics=("parallel",)),
    )

    if len(blocks) == 1:
        wa = _flatten_conv_weight(blocks[0][0])
        wb = _flatten_conv_weight(blocks[0][1])
        out = pl.pallas_call(
            functools.partial(_single_forward_kernel, H=H, W=W, C=C),
            in_specs=[
                pl.BlockSpec((1, C, HW), lambda b: (b, 0, 0)),
                pl.BlockSpec(wa.shape, lambda b: (0, 0)),
                pl.BlockSpec(wb.shape, lambda b: (0, 0)),
            ],
            scratch_shapes=[
                pltpu.VMEM((C, HW + 2 * _PAD), jnp.float32),
                pltpu.VMEM((9 * C, HW), jnp.float32),
            ],
            **common,
        )(x_flat, wa, wb)
    else:
        assert len(blocks) == 2 and C % 2 == 0
        C_half = C // 2
        w0a = _flatten_conv_weight(blocks[0][0])
        w0b = _flatten_conv_weight(blocks[0][1])
        w1a = _flatten_conv_weight(blocks[1][0])
        w1b = _flatten_conv_weight(blocks[1][1])
        out = pl.pallas_call(
            functools.partial(_coupled_forward_kernel, H=H, W=W, C_half=C_half),
            in_specs=[
                pl.BlockSpec((1, C, HW), lambda b: (b, 0, 0)),
                pl.BlockSpec(w0a.shape, lambda b: (0, 0)),
                pl.BlockSpec(w0b.shape, lambda b: (0, 0)),
                pl.BlockSpec(w1a.shape, lambda b: (0, 0)),
                pl.BlockSpec(w1b.shape, lambda b: (0, 0)),
            ],
            scratch_shapes=[
                pltpu.VMEM((C_half, HW + 2 * _PAD), jnp.float32),
                pltpu.VMEM((9 * C_half, HW), jnp.float32),
            ],
            **common,
        )(x_flat, w0a, w0b, w1a, w1b)

    return out.reshape(N, C, H, W)


# ------------------------- init + pure-JAX reference ------------------------ #
def xavier_normal_conv_weight(key, cin, cout, kh=3, kw=3, dtype=jnp.float32):
    """Matches torch.nn.init.xavier_normal_ for a Conv2d weight (Cout,Cin,kh,kw)."""
    fan_in = cin * kh * kw
    fan_out = cout * kh * kw
    std = (2.0 / (fan_in + fan_out)) ** 0.5
    return (jax.random.normal(key, (cout, cin, kh, kw), jnp.float32) * std).astype(dtype)


def _conv_ref(x, w):
    return jax.lax.conv_general_dilated(
        x, w, window_strides=(1, 1), padding=((1, 1), (1, 1)),
        dimension_numbers=("NCHW", "OIHW", "NCHW"),
        precision=jax.lax.Precision.HIGHEST)


def _block_ref(x, w1, w2):
    return jnp.tanh(_conv_ref(jax.nn.relu(_conv_ref(x, w1)), w2))


def forward_block_model_ref(x, blocks):
    if len(blocks) == 1:
        return x + _block_ref(x, *blocks[0])
    c = x.shape[1] // 2
    x1, x2 = x[:, :c], x[:, c:]
    y1 = x1 + _block_ref(x2, *blocks[0])
    y2 = x2 + _block_ref(y1, *blocks[1])
    return jnp.concatenate([y1, y2], axis=1)


if __name__ == "__main__":
    key = jax.random.PRNGKey(0)
    kx, k1, k2, k3, k4 = jax.random.split(key, 5)

    N, C, H, W = 2, 4, 16, 16
    x = jax.random.normal(kx, (N, C, H, W), jnp.float32)

    fwd = jax.jit(forward_block_model_forward)

    # Two-block (coupling) branch: chunk -> block0 -> add -> block1 -> add -> cat.
    C_half = C // 2
    blocks2 = [
        (xavier_normal_conv_weight(k1, C_half, C_half),
         xavier_normal_conv_weight(k2, C_half, C_half)),
        (xavier_normal_conv_weight(k3, C_half, C_half),
         xavier_normal_conv_weight(k4, C_half, C_half)),
    ]
    out2 = jax.block_until_ready(fwd(x, blocks2))
    ref2 = forward_block_model_ref(x, blocks2)
    assert out2.shape == (N, C, H, W) and out2.dtype == jnp.float32
    d2 = float(jnp.max(jnp.abs(out2 - ref2)))
    assert bool(jnp.allclose(out2, ref2, rtol=5e-2, atol=5e-2)), d2

    # One-block (residual) branch: y = x + block(x).
    blocks1 = [(xavier_normal_conv_weight(k1, C, C),
                xavier_normal_conv_weight(k2, C, C))]
    out1 = jax.block_until_ready(fwd(x, blocks1))
    ref1 = forward_block_model_ref(x, blocks1)
    assert out1.shape == (N, C, H, W)
    d1 = float(jnp.max(jnp.abs(out1 - ref1)))
    assert bool(jnp.allclose(out1, ref1, rtol=5e-2, atol=5e-2)), d1

    print("KERNEL_OK")
</pallas_src>

<mosaic_0001>
module attributes {stable_mosaic.version = 11 : i64} {
  func.func @_coupled_forward_kernel(%arg0: i32, %arg1: memref<1x4x256xf32, #tpu.memory_space<vmem>>, %arg2: memref<2x18xf32, #tpu.memory_space<vmem>>, %arg3: memref<2x18xf32, #tpu.memory_space<vmem>>, %arg4: memref<2x18xf32, #tpu.memory_space<vmem>>, %arg5: memref<2x18xf32, #tpu.memory_space<vmem>>, %arg6: memref<1x4x256xf32, #tpu.memory_space<vmem>>, %arg7: memref<2x512xf32, #tpu.memory_space<vmem>>, %arg8: memref<18x256xf32, #tpu.memory_space<vmem>>) attributes {dimension_semantics = [#tpu.dimension_semantics<parallel>], iteration_bounds = array<i64: 2>, scalar_prefetch = 0 : i64, scratch_operands = 2 : i64, tpu.core_type = #tpu.core_type<tc>, window_params = [{transform_indices = @transform_0, window_bounds = array<i64: 1, 4, 256>}, {pipeline_mode = #tpu.pipeline_mode<synchronous>, transform_indices = @transform_1, window_bounds = array<i64: 2, 18>}, {pipeline_mode = #tpu.pipeline_mode<synchronous>, transform_indices = @transform_2, window_bounds = array<i64: 2, 18>}, {pipeline_mode = #tpu.pipeline_mode<synchronous>, transform_indices = @transform_3, window_bounds = array<i64: 2, 18>}, {pipeline_mode = #tpu.pipeline_mode<synchronous>, transform_indices = @transform_4, window_bounds = array<i64: 2, 18>}, {transform_indices = @transform_5, window_bounds = array<i64: 1, 4, 256>}]} {
    %cst = arith.constant 0.000000e+00 : f32
    %0 = vector.broadcast %cst : f32 to vector<2x128xf32>
    %c0 = arith.constant 0 : index
    %c0_0 = arith.constant 0 : index
    %1 = vector.load %arg7[%c0, %c0_0] : memref<2x512xf32, #tpu.memory_space<vmem>>, vector<2x128xf32>
    tpu.vector_store %arg7[%c0, %c0_0], %0 {strides = array<i32>} : memref<2x512xf32, #tpu.memory_space<vmem>>, vector<2x128xf32>,
    %cst_1 = arith.constant 0.000000e+00 : f32
    %2 = vector.broadcast %cst_1 : f32 to vector<2x128xf32>
    %c0_2 = arith.constant 0 : index
    %c384 = arith.constant 384 : index
    %3 = vector.load %arg7[%c0_2, %c384] : memref<2x512xf32, #tpu.memory_space<vmem>>, vector<2x128xf32>
    tpu.vector_store %arg7[%c0_2, %c384], %2 {strides = array<i32>} : memref<2x512xf32, #tpu.memory_space<vmem>>, vector<2x128xf32>,
    %4 = tpu.iota {dimensions = array<i32: 1>} : vector<1x256xi32>
    %c16_i32 = arith.constant 16 : i32
    %c0_i32 = arith.constant 0 : i32
    %5 = arith.cmpi eq, %c16_i32, %c0_i32 : i32
    %c1_i32 = arith.constant 1 : i32
    %6 = arith.select %5, %c1_i32, %c16_i32 : i32
    %7 = vector.broadcast %6 : i32 to vector<1x256xi32>
    %8 = arith.remsi %4, %7 : vector<1x256xi32>
    %c0_i32_3 = arith.constant 0 : i32
    %9 = vector.broadcast %c0_i32_3 : i32 to vector<1x256xi32>
    %10 = arith.cmpi ne, %8, %9 : vector<1x256xi32>
    %c0_i32_4 = arith.constant 0 : i32
    %11 = vector.broadcast %c0_i32_4 : i32 to vector<1x256xi32>
    %12 = arith.cmpi slt, %8, %11 : vector<1x256xi32>
    %c0_i32_5 = arith.constant 0 : i32
    %13 = arith.cmpi slt, %6, %c0_i32_5 : i32
    %14 = vector.broadcast %13 : i1 to vector<1x256xi1>
    %15 = vector.broadcast %14 : vector<1x256xi1> to vector<1x256xi1>
    %16 = arith.xori %12, %15 : vector<1x256xi1>
    %17 = arith.andi %16, %10 : vector<1x256xi1>
    %18 = vector.broadcast %6 : i32 to vector<1x256xi32>
    %19 = arith.addi %8, %18 : vector<1x256xi32>
    %20 = arith.select %17, %19, %8 : vector<1x256xi1>, vector<1x256xi32>
    %c1_i32_6 = arith.constant 1 : i32
    %21 = vector.broadcast %c1_i32_6 : i32 to vector<1x256xi32>
    %22 = arith.cmpi sge, %20, %21 : vector<1x256xi32>
    %c14_i32 = arith.constant 14 : i32
    %23 = vector.broadcast %c14_i32 : i32 to vector<1x256xi32>
    %24 = arith.cmpi sle, %20, %23 : vector<1x256xi32>
    %c0_7 = arith.constant 0 : index
    %c0_8 = arith.constant 0 : index
    %c0_9 = arith.constant 0 : index
    %25 = vector.load %arg1[%c0_7, %c0_8, %c0_9] : memref<1x4x256xf32, #tpu.memory_space<vmem>>, vector<1x2x256xf32>
    %26 = vector.shape_cast %25 : vector<1x2x256xf32> to vector<2x256xf32>
    %c0_10 = arith.constant 0 : index
    %c2 = arith.constant 2 : index
    %c0_11 = arith.constant 0 : index
    %27 = vector.load %arg1[%c0_10, %c2, %c0_11] : memref<1x4x256xf32, #tpu.memory_space<vmem>>, vector<1x2x256xf32>
    %28 = vector.shape_cast %27 : vector<1x2x256xf32> to vector<2x256xf32>
    %c0_12 = arith.constant 0 : index
    %c128 = arith.constant 128 : index
    %29 = vector.load %arg7[%c0_12, %c128] : memref<2x512xf32, #tpu.memory_space<vmem>>, vector<2x256xf32>
    tpu.vector_store %arg7[%c0_12, %c128], %28 {strides = array<i32>} : memref<2x512xf32, #tpu.memory_space<vmem>>, vector<2x256xf32>,
    %c0_13 = arith.constant 0 : index
    %c111 = arith.constant 111 : index
    %30 = vector.load %arg7[%c0_13, %c111] : memref<2x512xf32, #tpu.memory_space<vmem>>, vector<2x256xf32>
    %cst_14 = arith.constant 0.000000e+00 : f32
    %31 = vector.shape_cast %22 : vector<1x256xi1> to vector<1x256xi1>
    %32 = vector.broadcast %31 : vector<1x256xi1> to vector<2x256xi1>
    %33 = vector.broadcast %cst_14 : f32 to vector<2x256xf32>
    %34 = arith.select %32, %30, %33 : vector<2x256xi1>, vector<2x256xf32>
    %c0_15 = arith.constant 0 : index
    %c0_16 = arith.constant 0 : index
    %35 = vector.load %arg8[%c0_15, %c0_16] : memref<18x256xf32, #tpu.memory_space<vmem>>, vector<2x256xf32>
    tpu.vector_store %arg8[%c0_15, %c0_16], %34 {strides = array<i32>} : memref<18x256xf32, #tpu.memory_space<vmem>>, vector<2x256xf32>,
    %c0_17 = arith.constant 0 : index
    %c112 = arith.constant 112 : index
    %36 = vector.load %arg7[%c0_17, %c112] : memref<2x512xf32, #tpu.memory_space<vmem>>, vector<2x256xf32>
    %c2_18 = arith.constant 2 : index
    %c0_19 = arith.constant 0 : index
    %37 = vector.load %arg8[%c2_18, %c0_19] : memref<18x256xf32, #tpu.memory_space<vmem>>, vector<2x256xf32>
    tpu.vector_store %arg8[%c2_18, %c0_19], %36 {strides = array<i32>} : memref<18x256xf32, #tpu.memory_space<vmem>>, vector<2x256xf32>,
    %c0_20 = arith.constant 0 : index
    %c113 = arith.constant 113 : index
    %38 = vector.load %arg7[%c0_20, %c113] : memref<2x512xf32, #tpu.memory_space<vmem>>, vector<2x256xf32>
    %cst_21 = arith.constant 0.000000e+00 : f32
    %39 = vector.shape_cast %24 : vector<1x256xi1> to vector<1x256xi1>
    %40 = vector.broadcast %39 : vector<1x256xi1> to vector<2x256xi1>
    %41 = vector.broadcast %cst_21 : f32 to vector<2x256xf32>
    %42 = arith.select %40, %38, %41 : vector<2x256xi1>, vector<2x256xf32>
    %c4 = arith.constant 4 : index
    %c0_22 = arith.constant 0 : index
    %43 = vector.load %arg8[%c4, %c0_22] : memref<18x256xf32, #tpu.memory_space<vmem>>, vector<2x256xf32>
    tpu.vector_store %arg8[%c4, %c0_22], %42 {strides = array<i32>} : memref<18x256xf32, #tpu.memory_space<vmem>>, vector<2x256xf32>,
    %c0_23 = arith.constant 0 : index
    %c127 = arith.constant 127 : index
    %44 = vector.load %arg7[%c0_23, %c127] : memref<2x512xf32, #tpu.memory_space<vmem>>, vector<2x256xf32>
    %cst_24 = arith.constant 0.000000e+00 : f32
    %45 = vector.shape_cast %22 : vector<1x256xi1> to vector<1x256xi1>
    %46 = vector.broadcast %45 : vector<1x256xi1> to vector<2x256xi1>
    %47 = vector.broadcast %cst_24 : f32 to vector<2x256xf32>
    %48 = arith.select %46, %44, %47 : vector<2x256xi1>, vector<2x256xf32>
    %c6 = arith.constant 6 : index
    %c0_25 = arith.constant 0 : index
    %49 = vector.load %arg8[%c6, %c0_25] : memref<18x256xf32, #tpu.memory_space<vmem>>, vector<2x256xf32>
    tpu.vector_store %arg8[%c6, %c0_25], %48 {strides = array<i32>} : memref<18x256xf32, #tpu.memory_space<vmem>>, vector<2x256xf32>,
    %c0_26 = arith.constant 0 : index
    %c128_27 = arith.constant 128 : index
    %50 = vector.load %arg7[%c0_26, %c128_27] : memref<2x512xf32, #tpu.memory_space<vmem>>, vector<2x256xf32>
    %c8 = arith.constant 8 : index
    %c0_28 = arith.constant 0 : index
    %51 = vector.load %arg8[%c8, %c0_28] : memref<18x256xf32, #tpu.memory_space<vmem>>, vector<2x256xf32>
    tpu.vector_store %arg8[%c8, %c0_28], %50 {strides = array<i32>} : memref<18x256xf32, #tpu.memory_space<vmem>>, vector<2x256xf32>,
    %c0_29 = arith.constant 0 : index
    %c129 = arith.constant 129 : index
    %52 = vector.load %arg7[%c0_29, %c129] : memref<2x512xf32, #tpu.memory_space<vmem>>, vector<2x256xf32>
    %cst_30 = arith.constant 0.000000e+00 : f32
    %53 = vector.shape_cast %24 : vector<1x256xi1> to vector<1x256xi1>
    %54 = vector.broadcast %53 : vector<1x256xi1> to vector<2x256xi1>
    %55 = vector.broadcast %cst_30 : f32 to vector<2x256xf32>
    %56 = arith.select %54, %52, %55 : vector<2x256xi1>, vector<2x256xf32>
    %c10 = arith.constant 10 : index
    %c0_31 = arith.constant 0 : index
    %57 = vector.load %arg8[%c10, %c0_31] : memref<18x256xf32, #tpu.memory_space<vmem>>, vector<2x256xf32>
    tpu.vector_store %arg8[%c10, %c0_31], %56 {strides = array<i32>} : memref<18x256xf32, #tpu.memory_space<vmem>>, vector<2x256xf32>,
    %c0_32 = arith.constant 0 : index
    %c143 = arith.constant 143 : index
    %58 = vector.load %arg7[%c0_32, %c143] : memref<2x512xf32, #tpu.memory_space<vmem>>, vector<2x256xf32>
    %cst_33 = arith.constant 0.000000e+00 : f32
    %59 = vector.shape_cast %22 : vector<1x256xi1> to vector<1x256xi1>
    %60 = vector.broadcast %59 : vector<1x256xi1> to vector<2x256xi1>
    %61 = vector.broadcast %cst_33 : f32 to vector<2x256xf32>
    %62 = arith.select %60, %58, %61 : vector<2x256xi1>, vector<2x256xf32>
    %c12 = arith.constant 12 : index
    %c0_34 = arith.constant 0 : index
    %63 = vector.load %arg8[%c12, %c0_34] : memref<18x256xf32, #tpu.memory_space<vmem>>, vector<2x256xf32>
    tpu.vector_store %arg8[%c12, %c0_34], %62 {strides = array<i32>} : memref<18x256xf32, #tpu.memory_space<vmem>>, vector<2x256xf32>,
    %c0_35 = arith.constant 0 : index
    %c144 = arith.constant 144 : index
    %64 = vector.load %arg7[%c0_35, %c144] : memref<2x512xf32, #tpu.memory_space<vmem>>, vector<2x256xf32>
    %c14 = arith.constant 14 : index
    %c0_36 = arith.constant 0 : index
    %65 = vector.load %arg8[%c14, %c0_36] : memref<18x256xf32, #tpu.memory_space<vmem>>, vector<2x256xf32>
    tpu.vector_store %arg8[%c14, %c0_36], %64 {strides = array<i32>} : memref<18x256xf32, #tpu.memory_space<vmem>>, vector<2x256xf32>,
    %c0_37 = arith.constant 0 : index
    %c145 = arith.constant 145 : index
    %66 = vector.load %arg7[%c0_37, %c145] : memref<2x512xf32, #tpu.memory_space<vmem>>, vector<2x256xf32>
    %cst_38 = arith.constant 0.000000e+00 : f32
    %67 = vector.shape_cast %24 : vector<1x256xi1> to vector<1x256xi1>
    %68 = vector.broadcast %67 : vector<1x256xi1> to vector<2x256xi1>
    %69 = vector.broadcast %cst_38 : f32 to vector<2x256xf32>
    %70 = arith.select %68, %66, %69 : vector<2x256xi1>, vector<2x256xf32>
    %c16 = arith.constant 16 : index
    %c0_39 = arith.constant 0 : index
    %71 = vector.load %arg8[%c16, %c0_39] : memref<18x256xf32, #tpu.memory_space<vmem>>, vector<2x256xf32>
    tpu.vector_store %arg8[%c16, %c0_39], %70 {strides = array<i32>} : memref<18x256xf32, #tpu.memory_space<vmem>>, vector<2x256xf32>,
    %c0_40 = arith.constant 0 : index
    %c0_41 = arith.constant 0 : index
    %72 = vector.load %arg2[%c0_40, %c0_41] : memref<2x18xf32, #tpu.memory_space<vmem>>, vector<2x18xf32>
    %c0_42 = arith.constant 0 : index
    %c0_43 = arith.constant 0 : index
    %73 = vector.load %arg8[%c0_42, %c0_43] : memref<18x256xf32, #tpu.memory_space<vmem>>, vector<18x256xf32>
    %cst_44 = arith.constant dense<0.000000e+00> : vector<2x256xf32>
    %74 = tpu.matmul %72, %73, %cst_44 {dimension_numbers = #tpu.dot_dimension_numbers<[1], [0], [0], [1], [0, 0, 1, 1], [], []>} : vector<2x18xf32>, vector<18x256xf32>, vector<2x256xf32> -> vector<2x256xf32>
    %cst_45 = arith.constant 0.000000e+00 : f32
    %75 = vector.broadcast %cst_45 : f32 to vector<2x256xf32>
    %76 = arith.maximumf %74, %75 : vector<2x256xf32>
    %c0_46 = arith.constant 0 : index
    %c128_47 = arith.constant 128 : index
    %77 = vector.load %arg7[%c0_46, %c128_47] : memref<2x512xf32, #tpu.memory_space<vmem>>, vector<2x256xf32>
    tpu.vector_store %arg7[%c0_46, %c128_47], %76 {strides = array<i32>} : memref<2x512xf32, #tpu.memory_space<vmem>>, vector<2x256xf32>,
    %c0_48 = arith.constant 0 : index
    %c111_49 = arith.constant 111 : index
    %78 = vector.load %arg7[%c0_48, %c111_49] : memref<2x512xf32, #tpu.memory_space<vmem>>, vector<2x256xf32>
    %cst_50 = arith.constant 0.000000e+00 : f32
    %79 = vector.shape_cast %22 : vector<1x256xi1> to vector<1x256xi1>
    %80 = vector.broadcast %79 : vector<1x256xi1> to vector<2x256xi1>
    %81 = vector.broadcast %cst_50 : f32 to vector<2x256xf32>
    %82 = arith.select %80, %78, %81 : vector<2x256xi1>, vector<2x256xf32>
    %c0_51 = arith.constant 0 : index
    %c0_52 = arith.constant 0 : index
    %83 = vector.load %arg8[%c0_51, %c0_52] : memref<18x256xf32, #tpu.memory_space<vmem>>, vector<2x256xf32>
    tpu.vector_store %arg8[%c0_51, %c0_52], %82 {strides = array<i32>} : memref<18x256xf32, #tpu.memory_space<vmem>>, vector<2x256xf32>,
    %c0_53 = arith.constant 0 : index
    %c112_54 = arith.constant 112 : index
    %84 = vector.load %arg7[%c0_53, %c112_54] : memref<2x512xf32, #tpu.memory_space<vmem>>, vector<2x256xf32>
    %c2_55 = arith.constant 2 : index
    %c0_56 = arith.constant 0 : index
    %85 = vector.load %arg8[%c2_55, %c0_56] : memref<18x256xf32, #tpu.memory_space<vmem>>, vector<2x256xf32>
    tpu.vector_store %arg8[%c2_55, %c0_56], %84 {strides = array<i32>} : memref<18x256xf32, #tpu.memory_space<vmem>>, vector<2x256xf32>,
    %c0_57 = arith.constant 0 : index
    %c113_58 = arith.constant 113 : index
    %86 = vector.load %arg7[%c0_57, %c113_58] : memref<2x512xf32, #tpu.memory_space<vmem>>, vector<2x256xf32>
    %cst_59 = arith.constant 0.000000e+00 : f32
    %87 = vector.shape_cast %24 : vector<1x256xi1> to vector<1x256xi1>
    %88 = vector.broadcast %87 : vector<1x256xi1> to vector<2x256xi1>
    %89 = vector.broadcast %cst_59 : f32 to vector<2x256xf32>
    %90 = arith.select %88, %86, %89 : vector<2x256xi1>, vector<2x256xf32>
    %c4_60 = arith.constant 4 : index
    %c0_61 = arith.constant 0 : index
    %91 = vector.load %arg8[%c4_60, %c0_61] : memref<18x256xf32, #tpu.memory_space<vmem>>, vector<2x256xf32>
    tpu.vector_store %arg8[%c4_60, %c0_61], %90 {strides = array<i32>} : memref<18x256xf32, #tpu.memory_space<vmem>>, vector<2x256xf32>,
    %c0_62 = arith.constant 0 : index
    %c127_63 = arith.constant 127 : index
    %92 = vector.load %arg7[%c0_62, %c127_63] : memref<2x512xf32, #tpu.memory_space<vmem>>, vector<2x256xf32>
    %cst_64 = arith.constant 0.000000e+00 : f32
    %93 = vector.shape_cast %22 : vector<1x256xi1> to vector<1x256xi1>
    %94 = vector.broadcast %93 : vector<1x256xi1> to vector<2x256xi1>
    %95 = vector.broadcast %cst_64 : f32 to vector<2x256xf32>
    %96 = arith.select %94, %92, %95 : vector<2x256xi1>, vector<2x256xf32>
    %c6_65 = arith.constant 6 : index
    %c0_66 = arith.constant 0 : index
    %97 = vector.load %arg8[%c6_65, %c0_66] : memref<18x256xf32, #tpu.memory_space<vmem>>, vector<2x256xf32>
    tpu.vector_store %arg8[%c6_65, %c0_66], %96 {strides = array<i32>} : memref<18x256xf32, #tpu.memory_space<vmem>>, vector<2x256xf32>,
    %c0_67 = arith.constant 0 : index
    %c128_68 = arith.constant 128 : index
    %98 = vector.load %arg7[%c0_67, %c128_68] : memref<2x512xf32, #tpu.memory_space<vmem>>, vector<2x256xf32>
    %c8_69 = arith.constant 8 : index
    %c0_70 = arith.constant 0 : index
    %99 = vector.load %arg8[%c8_69, %c0_70] : memref<18x256xf32, #tpu.memory_space<vmem>>, vector<2x256xf32>
    tpu.vector_store %arg8[%c8_69, %c0_70], %98 {strides = array<i32>} : memref<18x256xf32, #tpu.memory_space<vmem>>, vector<2x256xf32>,
    %c0_71 = arith.constant 0 : index
    %c129_72 = arith.constant 129 : index
    %100 = vector.load %arg7[%c0_71, %c129_72] : memref<2x512xf32, #tpu.memory_space<vmem>>, vector<2x256xf32>
    %cst_73 = arith.constant 0.000000e+00 : f32
    %101 = vector.shape_cast %24 : vector<1x256xi1> to vector<1x256xi1>
    %102 = vector.broadcast %101 : vector<1x256xi1> to vector<2x256xi1>
    %103 = vector.broadcast %cst_73 : f32 to vector<2x256xf32>
    %104 = arith.select %102, %100, %103 : vector<2x256xi1>, vector<2x256xf32>
    %c10_74 = arith.constant 10 : index
    %c0_75 = arith.constant 0 : index
    %105 = vector.load %arg8[%c10_74, %c0_75] : memref<18x256xf32, #tpu.memory_space<vmem>>, vector<2x256xf32>
    tpu.vector_store %arg8[%c10_74, %c0_75], %104 {strides = array<i32>} : memref<18x256xf32, #tpu.memory_space<vmem>>, vector<2x256xf32>,
    %c0_76 = arith.constant 0 : index
    %c143_77 = arith.constant 143 : index
    %106 = vector.load %arg7[%c0_76, %c143_77] : memref<2x512xf32, #tpu.memory_space<vmem>>, vector<2x256xf32>
    %cst_78 = arith.constant 0.000000e+00 : f32
    %107 = vector.shape_cast %22 : vector<1x256xi1> to vector<1x256xi1>
    %108 = vector.broadcast %107 : vector<1x256xi1> to vector<2x256xi1>
    %109 = vector.broadcast %cst_78 : f32 to vector<2x256xf32>
    %110 = arith.select %108, %106, %109 : vector<2x256xi1>, vector<2x256xf32>
    %c12_79 = arith.constant 12 : index
    %c0_80 = arith.constant 0 : index
    %111 = vector.load %arg8[%c12_79, %c0_80] : memref<18x256xf32, #tpu.memory_space<vmem>>, vector<2x256xf32>
    tpu.vector_store %arg8[%c12_79, %c0_80], %110 {strides = array<i32>} : memref<18x256xf32, #tpu.memory_space<vmem>>, vector<2x256xf32>,
    %c0_81 = arith.constant 0 : index
    %c144_82 = arith.constant 144 : index
    %112 = vector.load %arg7[%c0_81, %c144_82] : memref<2x512xf32, #tpu.memory_space<vmem>>, vector<2x256xf32>
    %c14_83 = arith.constant 14 : index
    %c0_84 = arith.constant 0 : index
    %113 = vector.load %arg8[%c14_83, %c0_84] : memref<18x256xf32, #tpu.memory_space<vmem>>, vector<2x256xf32>
    tpu.vector_store %arg8[%c14_83, %c0_84], %112 {strides = array<i32>} : memref<18x256xf32, #tpu.memory_space<vmem>>, vector<2x256xf32>,
    %c0_85 = arith.constant 0 : index
    %c145_86 = arith.constant 145 : index
    %114 = vector.load %arg7[%c0_85, %c145_86] : memref<2x512xf32, #tpu.memory_space<vmem>>, vector<2x256xf32>
    %cst_87 = arith.constant 0.000000e+00 : f32
    %115 = vector.shape_cast %24 : vector<1x256xi1> to vector<1x256xi1>
    %116 = vector.broadcast %115 : vector<1x256xi1> to vector<2x256xi1>
    %117 = vector.broadcast %cst_87 : f32 to vector<2x256xf32>
    %118 = arith.select %116, %114, %117 : vector<2x256xi1>, vector<2x256xf32>
    %c16_88 = arith.constant 16 : index
    %c0_89 = arith.constant 0 : index
    %119 = vector.load %arg8[%c16_88, %c0_89] : memref<18x256xf32, #tpu.memory_space<vmem>>, vector<2x256xf32>
    tpu.vector_store %arg8[%c16_88, %c0_89], %118 {strides = array<i32>} : memref<18x256xf32, #tpu.memory_space<vmem>>, vector<2x256xf32>,
    %c0_90 = arith.constant 0 : index
    %c0_91 = arith.constant 0 : index
    %120 = vector.load %arg3[%c0_90, %c0_91] : memref<2x18xf32, #tpu.memory_space<vmem>>, vector<2x18xf32>
    %c0_92 = arith.constant 0 : index
    %c0_93 = arith.constant 0 : index
    %121 = vector.load %arg8[%c0_92, %c0_93] : memref<18x256xf32, #tpu.memory_space<vmem>>, vector<18x256xf32>
    %cst_94 = arith.constant dense<0.000000e+00> : vector<2x256xf32>
    %122 = tpu.matmul %120, %121, %cst_94 {dimension_numbers = #tpu.dot_dimension_numbers<[1], [0], [0], [1], [0, 0, 1, 1], [], []>} : vector<2x18xf32>, vector<18x256xf32>, vector<2x256xf32> -> vector<2x256xf32>
    %123 = math.tanh %122 : vector<2x256xf32>
    %124 = arith.addf %26, %123 : vector<2x256xf32>
    %c0_95 = arith.constant 0 : index
    %c128_96 = arith.constant 128 : index
    %125 = vector.load %arg7[%c0_95, %c128_96] : memref<2x512xf32, #tpu.memory_space<vmem>>, vector<2x256xf32>
    tpu.vector_store %arg7[%c0_95, %c128_96], %124 {strides = array<i32>} : memref<2x512xf32, #tpu.memory_space<vmem>>, vector<2x256xf32>,
    %c0_97 = arith.constant 0 : index
    %c111_98 = arith.constant 111 : index
    %126 = vector.load %arg7[%c0_97, %c111_98] : memref<2x512xf32, #tpu.memory_space<vmem>>, vector<2x256xf32>
    %cst_99 = arith.constant 0.000000e+00 : f32
    %127 = vector.shape_cast %22 : vector<1x256xi1> to vector<1x256xi1>
    %128 = vector.broadcast %127 : vector<1x256xi1> to vector<2x256xi1>
    %129 = vector.broadcast %cst_99 : f32 to vector<2x256xf32>
    %130 = arith.select %128, %126, %129 : vector<2x256xi1>, vector<2x256xf32>
    %c0_100 = arith.constant 0 : index
    %c0_101 = arith.constant 0 : index
    %131 = vector.load %arg8[%c0_100, %c0_101] : memref<18x256xf32, #tpu.memory_space<vmem>>, vector<2x256xf32>
    tpu.vector_store %arg8[%c0_100, %c0_101], %130 {strides = array<i32>} : memref<18x256xf32, #tpu.memory_space<vmem>>, vector<2x256xf32>,
    %c0_102 = arith.constant 0 : index
    %c112_103 = arith.constant 112 : index
    %132 = vector.load %arg7[%c0_102, %c112_103] : memref<2x512xf32, #tpu.memory_space<vmem>>, vector<2x256xf32>
    %c2_104 = arith.constant 2 : index
    %c0_105 = arith.constant 0 : index
    %133 = vector.load %arg8[%c2_104, %c0_105] : memref<18x256xf32, #tpu.memory_space<vmem>>, vector<2x256xf32>
    tpu.vector_store %arg8[%c2_104, %c0_105], %132 {strides = array<i32>} : memref<18x256xf32, #tpu.memory_space<vmem>>, vector<2x256xf32>,
    %c0_106 = arith.constant 0 : index
    %c113_107 = arith.constant 113 : index
    %134 = vector.load %arg7[%c0_106, %c113_107] : memref<2x512xf32, #tpu.memory_space<vmem>>, vector<2x256xf32>
    %cst_108 = arith.constant 0.000000e+00 : f32
    %135 = vector.shape_cast %24 : vector<1x256xi1> to vector<1x256xi1>
    %136 = vector.broadcast %135 : vector<1x256xi1> to vector<2x256xi1>
    %137 = vector.broadcast %cst_108 : f32 to vector<2x256xf32>
    %138 = arith.select %136, %134, %137 : vector<2x256xi1>, vector<2x256xf32>
    %c4_109 = arith.constant 4 : index
    %c0_110 = arith.constant 0 : index
    %139 = vector.load %arg8[%c4_109, %c0_110] : memref<18x256xf32, #tpu.memory_space<vmem>>, vector<2x256xf32>
    tpu.vector_store %arg8[%c4_109, %c0_110], %138 {strides = array<i32>} : memref<18x256xf32, #tpu.memory_space<vmem>>, vector<2x256xf32>,
    %c0_111 = arith.constant 0 : index
    %c127_112 = arith.constant 127 : index
    %140 = vector.load %arg7[%c0_111, %c127_112] : memref<2x512xf32, #tpu.memory_space<vmem>>, vector<2x256xf32>
    %cst_113 = arith.constant 0.000000e+00 : f32
    %141 = vector.shape_cast %22 : vector<1x256xi1> to vector<1x256xi1>
    %142 = vector.broadcast %141 : vector<1x256xi1> to vector<2x256xi1>
    %143 = vector.broadcast %cst_113 : f32 to vector<2x256xf32>
    %144 = arith.select %142, %140, %143 : vector<2x256xi1>, vector<2x256xf32>
    %c6_114 = arith.constant 6 : index
    %c0_115 = arith.constant 0 : index
    %145 = vector.load %arg8[%c6_114, %c0_115] : memref<18x256xf32, #tpu.memory_space<vmem>>, vector<2x256xf32>
    tpu.vector_store %arg8[%c6_114, %c0_115], %144 {strides = array<i32>} : memref<18x256xf32, #tpu.memory_space<vmem>>, vector<2x256xf32>,
    %c0_116 = arith.constant 0 : index
    %c128_117 = arith.constant 128 : index
    %146 = vector.load %arg7[%c0_116, %c128_117] : memref<2x512xf32, #tpu.memory_space<vmem>>, vector<2x256xf32>
    %c8_118 = arith.constant 8 : index
    %c0_119 = arith.constant 0 : index
    %147 = vector.load %arg8[%c8_118, %c0_119] : memref<18x256xf32, #tpu.memory_space<vmem>>, vector<2x256xf32>
    tpu.vector_store %arg8[%c8_118, %c0_119], %146 {strides = array<i32>} : memref<18x256xf32, #tpu.memory_space<vmem>>, vector<2x256xf32>,
    %c0_120 = arith.constant 0 : index
    %c129_121 = arith.constant 129 : index
    %148 = vector.load %arg7[%c0_120, %c129_121] : memref<2x512xf32, #tpu.memory_space<vmem>>, vector<2x256xf32>
    %cst_122 = arith.constant 0.000000e+00 : f32
    %149 = vector.shape_cast %24 : vector<1x256xi1> to vector<1x256xi1>
    %150 = vector.broadcast %149 : vector<1x256xi1> to vector<2x256xi1>
    %151 = vector.broadcast %cst_122 : f32 to vector<2x256xf32>
    %152 = arith.select %150, %148, %151 : vector<2x256xi1>, vector<2x256xf32>
    %c10_123 = arith.constant 10 : index
    %c0_124 = arith.constant 0 : index
    %153 = vector.load %arg8[%c10_123, %c0_124] : memref<18x256xf32, #tpu.memory_space<vmem>>, vector<2x256xf32>
    tpu.vector_store %arg8[%c10_123, %c0_124], %152 {strides = array<i32>} : memref<18x256xf32, #tpu.memory_space<vmem>>, vector<2x256xf32>,
    %c0_125 = arith.constant 0 : index
    %c143_126 = arith.constant 143 : index
    %154 = vector.load %arg7[%c0_125, %c143_126] : memref<2x512xf32, #tpu.memory_space<vmem>>, vector<2x256xf32>
    %cst_127 = arith.constant 0.000000e+00 : f32
    %155 = vector.shape_cast %22 : vector<1x256xi1> to vector<1x256xi1>
    %156 = vector.broadcast %155 : vector<1x256xi1> to vector<2x256xi1>
    %157 = vector.broadcast %cst_127 : f32 to vector<2x256xf32>
    %158 = arith.select %156, %154, %157 : vector<2x256xi1>, vector<2x256xf32>
    %c12_128 = arith.constant 12 : index
    %c0_129 = arith.constant 0 : index
    %159 = vector.load %arg8[%c12_128, %c0_129] : memref<18x256xf32, #tpu.memory_space<vmem>>, vector<2x256xf32>
    tpu.vector_store %arg8[%c12_128, %c0_129], %158 {strides = array<i32>} : memref<18x256xf32, #tpu.memory_space<vmem>>, vector<2x256xf32>,
    %c0_130 = arith.constant 0 : index
    %c144_131 = arith.constant 144 : index
    %160 = vector.load %arg7[%c0_130, %c144_131] : memref<2x512xf32, #tpu.memory_space<vmem>>, vector<2x256xf32>
    %c14_132 = arith.constant 14 : index
    %c0_133 = arith.constant 0 : index
    %161 = vector.load %arg8[%c14_132, %c0_133] : memref<18x256xf32, #tpu.memory_space<vmem>>, vector<2x256xf32>
    tpu.vector_store %arg8[%c14_132, %c0_133], %160 {strides = array<i32>} : memref<18x256xf32, #tpu.memory_space<vmem>>, vector<2x256xf32>,
    %c0_134 = arith.constant 0 : index
    %c145_135 = arith.constant 145 : index
    %162 = vector.load %arg7[%c0_134, %c145_135] : memref<2x512xf32, #tpu.memory_space<vmem>>, vector<2x256xf32>
    %cst_136 = arith.constant 0.000000e+00 : f32
    %163 = vector.shape_cast %24 : vector<1x256xi1> to vector<1x256xi1>
    %164 = vector.broadcast %163 : vector<1x256xi1> to vector<2x256xi1>
    %165 = vector.broadcast %cst_136 : f32 to vector<2x256xf32>
    %166 = arith.select %164, %162, %165 : vector<2x256xi1>, vector<2x256xf32>
    %c16_137 = arith.constant 16 : index
    %c0_138 = arith.constant 0 : index
    %167 = vector.load %arg8[%c16_137, %c0_138] : memref<18x256xf32, #tpu.memory_space<vmem>>, vector<2x256xf32>
    tpu.vector_store %arg8[%c16_137, %c0_138], %166 {strides = array<i32>} : memref<18x256xf32, #tpu.memory_space<vmem>>, vector<2x256xf32>,
    %c0_139 = arith.constant 0 : index
    %c0_140 = arith.constant 0 : index
    %168 = vector.load %arg4[%c0_139, %c0_140] : memref<2x18xf32, #tpu.memory_space<vmem>>, vector<2x18xf32>
    %c0_141 = arith.constant 0 : index
    %c0_142 = arith.constant 0 : index
    %169 = vector.load %arg8[%c0_141, %c0_142] : memref<18x256xf32, #tpu.memory_space<vmem>>, vector<18x256xf32>
    %cst_143 = arith.constant dense<0.000000e+00> : vector<2x256xf32>
    %170 = tpu.matmul %168, %169, %cst_143 {dimension_numbers = #tpu.dot_dimension_numbers<[1], [0], [0], [1], [0, 0, 1, 1], [], []>} : vector<2x18xf32>, vector<18x256xf32>, vector<2x256xf32> -> vector<2x256xf32>
    %cst_144 = arith.constant 0.000000e+00 : f32
    %171 = vector.broadcast %cst_144 : f32 to vector<2x256xf32>
    %172 = arith.maximumf %170, %171 : vector<2x256xf32>
    %c0_145 = arith.constant 0 : index
    %c128_146 = arith.constant 128 : index
    %173 = vector.load %arg7[%c0_145, %c128_146] : memref<2x512xf32, #tpu.memory_space<vmem>>, vector<2x256xf32>
    tpu.vector_store %arg7[%c0_145, %c128_146], %172 {strides = array<i32>} : memref<2x512xf32, #tpu.memory_space<vmem>>, vector<2x256xf32>,
    %c0_147 = arith.constant 0 : index
    %c111_148 = arith.constant 111 : index
    %174 = vector.load %arg7[%c0_147, %c111_148] : memref<2x512xf32, #tpu.memory_space<vmem>>, vector<2x256xf32>
    %cst_149 = arith.constant 0.000000e+00 : f32
    %175 = vector.shape_cast %22 : vector<1x256xi1> to vector<1x256xi1>
    %176 = vector.broadcast %175 : vector<1x256xi1> to vector<2x256xi1>
    %177 = vector.broadcast %cst_149 : f32 to vector<2x256xf32>
    %178 = arith.select %176, %174, %177 : vector<2x256xi1>, vector<2x256xf32>
    %c0_150 = arith.constant 0 : index
    %c0_151 = arith.constant 0 : index
    %179 = vector.load %arg8[%c0_150, %c0_151] : memref<18x256xf32, #tpu.memory_space<vmem>>, vector<2x256xf32>
    tpu.vector_store %arg8[%c0_150, %c0_151], %178 {strides = array<i32>} : memref<18x256xf32, #tpu.memory_space<vmem>>, vector<2x256xf32>,
    %c0_152 = arith.constant 0 : index
    %c112_153 = arith.constant 112 : index
    %180 = vector.load %arg7[%c0_152, %c112_153] : memref<2x512xf32, #tpu.memory_space<vmem>>, vector<2x256xf32>
    %c2_154 = arith.constant 2 : index
    %c0_155 = arith.constant 0 : index
    %181 = vector.load %arg8[%c2_154, %c0_155] : memref<18x256xf32, #tpu.memory_space<vmem>>, vector<2x256xf32>
    tpu.vector_store %arg8[%c2_154, %c0_155], %180 {strides = array<i32>} : memref<18x256xf32, #tpu.memory_space<vmem>>, vector<2x256xf32>,
    %c0_156 = arith.constant 0 : index
    %c113_157 = arith.constant 113 : index
    %182 = vector.load %arg7[%c0_156, %c113_157] : memref<2x512xf32, #tpu.memory_space<vmem>>, vector<2x256xf32>
    %cst_158 = arith.constant 0.000000e+00 : f32
    %183 = vector.shape_cast %24 : vector<1x256xi1> to vector<1x256xi1>
    %184 = vector.broadcast %183 : vector<1x256xi1> to vector<2x256xi1>
    %185 = vector.broadcast %cst_158 : f32 to vector<2x256xf32>
    %186 = arith.select %184, %182, %185 : vector<2x256xi1>, vector<2x256xf32>
    %c4_159 = arith.constant 4 : index
    %c0_160 = arith.constant 0 : index
    %187 = vector.load %arg8[%c4_159, %c0_160] : memref<18x256xf32, #tpu.memory_space<vmem>>, vector<2x256xf32>
    tpu.vector_store %arg8[%c4_159, %c0_160], %186 {strides = array<i32>} : memref<18x256xf32, #tpu.memory_space<vmem>>, vector<2x256xf32>,
    %c0_161 = arith.constant 0 : index
    %c127_162 = arith.constant 127 : index
    %188 = vector.load %arg7[%c0_161, %c127_162] : memref<2x512xf32, #tpu.memory_space<vmem>>, vector<2x256xf32>
    %cst_163 = arith.constant 0.000000e+00 : f32
    %189 = vector.shape_cast %22 : vector<1x256xi1> to vector<1x256xi1>
    %190 = vector.broadcast %189 : vector<1x256xi1> to vector<2x256xi1>
    %191 = vector.broadcast %cst_163 : f32 to vector<2x256xf32>
    %192 = arith.select %190, %188, %191 : vector<2x256xi1>, vector<2x256xf32>
    %c6_164 = arith.constant 6 : index
    %c0_165 = arith.constant 0 : index
    %193 = vector.load %arg8[%c6_164, %c0_165] : memref<18x256xf32, #tpu.memory_space<vmem>>, vector<2x256xf32>
    tpu.vector_store %arg8[%c6_164, %c0_165], %192 {strides = array<i32>} : memref<18x256xf32, #tpu.memory_space<vmem>>, vector<2x256xf32>,
    %c0_166 = arith.constant 0 : index
    %c128_167 = arith.constant 128 : index
    %194 = vector.load %arg7[%c0_166, %c128_167] : memref<2x512xf32, #tpu.memory_space<vmem>>, vector<2x256xf32>
    %c8_168 = arith.constant 8 : index
    %c0_169 = arith.constant 0 : index
    %195 = vector.load %arg8[%c8_168, %c0_169] : memref<18x256xf32, #tpu.memory_space<vmem>>, vector<2x256xf32>
    tpu.vector_store %arg8[%c8_168, %c0_169], %194 {strides = array<i32>} : memref<18x256xf32, #tpu.memory_space<vmem>>, vector<2x256xf32>,
    %c0_170 = arith.constant 0 : index
    %c129_171 = arith.constant 129 : index
    %196 = vector.load %arg7[%c0_170, %c129_171] : memref<2x512xf32, #tpu.memory_space<vmem>>, vector<2x256xf32>
    %cst_172 = arith.constant 0.000000e+00 : f32
    %197 = vector.shape_cast %24 : vector<1x256xi1> to vector<1x256xi1>
    %198 = vector.broadcast %197 : vector<1x256xi1> to vector<2x256xi1>
    %199 = vector.broadcast %cst_172 : f32 to vector<2x256xf32>
    %200 = arith.select %198, %196, %199 : vector<2x256xi1>, vector<2x256xf32>
    %c10_173 = arith.constant 10 : index
    %c0_174 = arith.constant 0 : index
    %201 = vector.load %arg8[%c10_173, %c0_174] : memref<18x256xf32, #tpu.memory_space<vmem>>, vector<2x256xf32>
    tpu.vector_store %arg8[%c10_173, %c0_174], %200 {strides = array<i32>} : memref<18x256xf32, #tpu.memory_space<vmem>>, vector<2x256xf32>,
    %c0_175 = arith.constant 0 : index
    %c143_176 = arith.constant 143 : index
    %202 = vector.load %arg7[%c0_175, %c143_176] : memref<2x512xf32, #tpu.memory_space<vmem>>, vector<2x256xf32>
    %cst_177 = arith.constant 0.000000e+00 : f32
    %203 = vector.shape_cast %22 : vector<1x256xi1> to vector<1x256xi1>
    %204 = vector.broadcast %203 : vector<1x256xi1> to vector<2x256xi1>
    %205 = vector.broadcast %cst_177 : f32 to vector<2x256xf32>
    %206 = arith.select %204, %202, %205 : vector<2x256xi1>, vector<2x256xf32>
    %c12_178 = arith.constant 12 : index
    %c0_179 = arith.constant 0 : index
    %207 = vector.load %arg8[%c12_178, %c0_179] : memref<18x256xf32, #tpu.memory_space<vmem>>, vector<2x256xf32>
    tpu.vector_store %arg8[%c12_178, %c0_179], %206 {strides = array<i32>} : memref<18x256xf32, #tpu.memory_space<vmem>>, vector<2x256xf32>,
    %c0_180 = arith.constant 0 : index
    %c144_181 = arith.constant 144 : index
    %208 = vector.load %arg7[%c0_180, %c144_181] : memref<2x512xf32, #tpu.memory_space<vmem>>, vector<2x256xf32>
    %c14_182 = arith.constant 14 : index
    %c0_183 = arith.constant 0 : index
    %209 = vector.load %arg8[%c14_182, %c0_183] : memref<18x256xf32, #tpu.memory_space<vmem>>, vector<2x256xf32>
    tpu.vector_store %arg8[%c14_182, %c0_183], %208 {strides = array<i32>} : memref<18x256xf32, #tpu.memory_space<vmem>>, vector<2x256xf32>,
    %c0_184 = arith.constant 0 : index
    %c145_185 = arith.constant 145 : index
    %210 = vector.load %arg7[%c0_184, %c145_185] : memref<2x512xf32, #tpu.memory_space<vmem>>, vector<2x256xf32>
    %cst_186 = arith.constant 0.000000e+00 : f32
    %211 = vector.shape_cast %24 : vector<1x256xi1> to vector<1x256xi1>
    %212 = vector.broadcast %211 : vector<1x256xi1> to vector<2x256xi1>
    %213 = vector.broadcast %cst_186 : f32 to vector<2x256xf32>
    %214 = arith.select %212, %210, %213 : vector<2x256xi1>, vector<2x256xf32>
    %c16_187 = arith.constant 16 : index
    %c0_188 = arith.constant 0 : index
    %215 = vector.load %arg8[%c16_187, %c0_188] : memref<18x256xf32, #tpu.memory_space<vmem>>, vector<2x256xf32>
    tpu.vector_store %arg8[%c16_187, %c0_188], %214 {strides = array<i32>} : memref<18x256xf32, #tpu.memory_space<vmem>>, vector<2x256xf32>,
    %c0_189 = arith.constant 0 : index
    %c0_190 = arith.constant 0 : index
    %216 = vector.load %arg5[%c0_189, %c0_190] : memref<2x18xf32, #tpu.memory_space<vmem>>, vector<2x18xf32>
    %c0_191 = arith.constant 0 : index
    %c0_192 = arith.constant 0 : index
    %217 = vector.load %arg8[%c0_191, %c0_192] : memref<18x256xf32, #tpu.memory_space<vmem>>, vector<18x256xf32>
    %cst_193 = arith.constant dense<0.000000e+00> : vector<2x256xf32>
    %218 = tpu.matmul %216, %217, %cst_193 {dimension_numbers = #tpu.dot_dimension_numbers<[1], [0], [0], [1], [0, 0, 1, 1], [], []>} : vector<2x18xf32>, vector<18x256xf32>, vector<2x256xf32> -> vector<2x256xf32>
    %219 = math.tanh %218 : vector<2x256xf32>
    %220 = arith.addf %28, %219 : vector<2x256xf32>
    %c0_194 = arith.constant 0 : index
    %c0_195 = arith.constant 0 : index
    %c0_196 = arith.constant 0 : index
    %221 = vector.load %arg6[%c0_194, %c0_195, %c0_196] : memref<1x4x256xf32, #tpu.memory_space<vmem>>, vector<1x2x256xf32>
    %222 = vector.shape_cast %221 : vector<1x2x256xf32> to vector<2x256xf32>
    %223 = vector.shape_cast %124 : vector<2x256xf32> to vector<1x2x256xf32>
    tpu.vector_store %arg6[%c0_194, %c0_195, %c0_196], %223 {strides = array<i32>} : memref<1x4x256xf32, #tpu.memory_space<vmem>>, vector<1x2x256xf32>,
    %c0_197 = arith.constant 0 : index
    %c2_198 = arith.constant 2 : index
    %c0_199 = arith.constant 0 : index
    %224 = vector.load %arg6[%c0_197, %c2_198, %c0_199] : memref<1x4x256xf32, #tpu.memory_space<vmem>>, vector<1x2x256xf32>
    %225 = vector.shape_cast %224 : vector<1x2x256xf32> to vector<2x256xf32>
    %226 = vector.shape_cast %220 : vector<2x256xf32> to vector<1x2x256xf32>
    tpu.vector_store %arg6[%c0_197, %c2_198, %c0_199], %226 {strides = array<i32>} : memref<1x4x256xf32, #tpu.memory_space<vmem>>, vector<1x2x256xf32>,
    return
  }
  func.func @transform_0(%arg0: i32) -> (i32, i32, i32) {
    %c0_i32 = arith.constant 0 : i32
    %c0_i32_0 = arith.constant 0 : i32
    %c0_i32_1 = arith.constant 0 : i32
    return %arg0, %c0_i32, %c0_i32_0 : i32, i32, i32
  }
  func.func @transform_1(%arg0: i32) -> (i32, i32) {
    %c0_i32 = arith.constant 0 : i32
    %c0_i32_0 = arith.constant 0 : i32
    %c0_i32_1 = arith.constant 0 : i32
    return %c0_i32, %c0_i32_0 : i32, i32
  }
  func.func @transform_2(%arg0: i32) -> (i32, i32) {
    %c0_i32 = arith.constant 0 : i32
    %c0_i32_0 = arith.constant 0 : i32
    %c0_i32_1 = arith.constant 0 : i32
    return %c0_i32, %c0_i32_0 : i32, i32
  }
  func.func @transform_3(%arg0: i32) -> (i32, i32) {
    %c0_i32 = arith.constant 0 : i32
    %c0_i32_0 = arith.constant 0 : i32
    %c0_i32_1 = arith.constant 0 : i32
    return %c0_i32, %c0_i32_0 : i32, i32
  }
  func.func @transform_4(%arg0: i32) -> (i32, i32) {
    %c0_i32 = arith.constant 0 : i32
    %c0_i32_0 = arith.constant 0 : i32
    %c0_i32_1 = arith.constant 0 : i32
    return %c0_i32, %c0_i32_0 : i32, i32
  }
  func.func @transform_5(%arg0: i32) -> (i32, i32, i32) {
    %c0_i32 = arith.constant 0 : i32
    %c0_i32_0 = arith.constant 0 : i32
    %c0_i32_1 = arith.constant 0 : i32
    return %arg0, %c0_i32, %c0_i32_0 : i32, i32, i32
  }
}

</mosaic_0001>

<bundles_post_ra>
// kernel: forward_block_model_forward.1
= control target key start
LH: loop header
LB: loop body
LE: loop exit
PB: predicated region body
PF: predicated region fallthrough
CT: control target
= control target key end

     0   :  { %s1469_s18 = smov 0   ;;  %s1838_s0 = inlined_call_operand.vmem [shape: f32[2,4,256], index: 0, kind: input, shape index: {}]   ;;  %s1839_s1 = inlined_call_operand.vmem [shape: f32[2,18], index: 1, kind: input, shape index: {}]   ;;  %s1840_s2 = inlined_call_operand.vmem [shape: f32[2,18], index: 2, kind: input, shape index: {}]   ;;  %s1841_s3 = inlined_call_operand.vmem [shape: f32[2,18], index: 3, kind: input, shape index: {}]   ;;  %s1842_s4 = inlined_call_operand.vmem [shape: f32[2,18], index: 4, kind: input, shape index: {}]   ;;  %s1843_s5 = inlined_call_operand.vmem [shape: f32[2,4,256], index: 5, kind: output, shape index: {}]  }
   0x1 LB: > { %s1368_s19 = sadd.s32 4294967295, %s1428_s18   ;;  %p1372_p0 = scmp.ge.s32.totalorder %s1428_s18, 1  ;;  %s1428_s18 = sphi %s1469_s18, %s15_s18  }
   0x2   : > { %p187_p1 = scmp.lt.s32.totalorder %s1428_s18, 3 }
   0x4   : > { %p188_p2 = pnand %p1372_p0, %p187_p1 }
   0x5   : > { %p215_p3 = scmp.lt.s32.totalorder (!%p188_p2), %s1368_s19, 1  ;;  %s1431_s24 = smov (!%p188_p2), 17  }
   0x6   : > { %191 = sbr.rel (%p188_p2) target bundleno = 1461 (0x5b5), region = 40  ;;  %s1432_s25 = smov (!%p188_p2), 16  }
   0x7   : > { %s1433_s26 = smov (!%p188_p2), 15   ;;  %s1434_s27 = smov (!%p188_p2), 1  }
   0x8   : > { %s1435_s28 = smov (!%p188_p2), 127   ;;  %s1436_s29 = smov (!%p188_p2), 113  }
   0x9   : > { %s1437_s30 = smov (!%p188_p2), 112   ;;  %s1438_s6 = smov (!%p188_p2), 111  }
   0xb   : > { %v1430_v0 = vmov 0.0   ;;  %s1853_s19 = smov (!%p215_p3, %s1368_s19), 1  ;;  %v227_v38 = vlaneseq  ;;  %vm282_vm0 = vcmask 138240   ;;  %vm304_vm2 = vcmask 130048  }
   0xc   : > { %225 = vst [vmem:[#allocation2] sm:$0x3] %v1430_v0  ;;  %s1395_s20 = sshll.u32 %s1853_s19, 3  ;;  %vm327_vm3 = vcmask 121856   ;;  %vm354_vm6 = vcmask 7168   ;;  %vm390_vm8 = vcmask 1039360  }
   0xd   : > { %226 = vst [vmem:[#allocation2 + $0x6] sm:$0x3] %v1430_v0  ;;  %s1485_s23 = scalar_lea.vmem %s1838_s0, %s1395_s20  ;;  %v228_v39 = vand.u32 127, %v227_v38  ;;  %vm417_vm9 = vcmask 924672   ;;  %vm464_vm10 = vcmask 908288   ;;  %vm484_vm11 = vcmask 1041408   ;;  %s1671_s13 = scalar_lea.vmem %s1843_s5, %s1395_s20 }
   0xe   : > { %v1488_v1 = vld [vmem:[%s1485_s23] sm:$0xcc]  ;;  %vm445_vm12 = vcmask 916480   ;;  %vm480_vm13 = vcmask 146432   ;;  %vm791_vm14 = vcmask 1043456  }
   0xf   : > { %261 = vst.sshfl [vmem:[#allocation1] sm:$0xff pattern:$0x75643120] %v1488_v1  ;;  %v229_v40 = vadd.s32 128, %v228_v39  ;;  %v234_v51 = vand.u32 15, %v228_v39 }
  0x11   : > { %v241_v41 = vand.u32 15, %v229_v40  ;;  %vm1529_vm4 = vcmp.le.s32.totalorder %v234_v51, 14  ;;  %vm1546_vm7 = vcmp.ge.s32.totalorder %v234_v51, 1 }
  0x13   : > { %vm1518_vm1 = vcmp.ge.s32.totalorder %v241_v41, 1  ;;  %vm1533_vm5 = vcmp.le.s32.totalorder %v241_v41, 14 }
  0x16   : > { %v263_v2 = vld [vmem:[#allocation1 + $0x1] ss:$2 sm:$0xff] }
  0x17   : > { %265 = vst [vmem:[#allocation2 + $0x2] sm:$0xf] %v263_v2 }
  0x1e   : > { %v266_v3 = vld [vmem:[#allocation2] sm:$0x3f] }
  0x1f   : > { %272 = vst [vmem:[#allocation1] ss:$4 sm:$0xff] %v266_v3  ;;  %v291_v4 = vld [vmem:[#allocation2] sm:$0x3f] }
  0x20   : > { %v311_v8 = vld [vmem:[#allocation2] sm:$0x3f] }
  0x21   : > { %v342_v12 = vld [vmem:[#allocation2] sm:$0x3f] }
  0x22   : > { %v369_v16 = vld [vmem:[#allocation2 + $0x2] sm:$0xf] }
  0x23   : > { %v378_v20 = vld [vmem:[#allocation2 + $0x2] sm:$0x3f] }
  0x24   : > { %v405_v23 = vld [vmem:[#allocation2 + $0x2] sm:$0x3f] }
  0x25   : > { %v432_v27 = vld [vmem:[#allocation2 + $0x2] sm:$0x3f] }
  0x26   : > { %v275_v5 = vld.sshfl [vmem:[#allocation1 + $0x10] sm:$0xff pattern:$0x73625140]  ;;  %v1491_v6 = vld.sshfl [vmem:[#allocation1] sm:$0xff pattern:$0x73625140] }
  0x27   : > { %280 = vrot.lane.b32.xlu1 %v275_v5, %s1431_s24  ;;  %v274_v7 = vld.sshfl [vmem:[#allocation1 + $0x8] sm:$0xff pattern:$0x73625140] }
  0x28   : > { %278 = vrot.lane.b32.xlu0 %v274_v7, %s1431_s24  ;;  %294 = vst [vmem:[#allocation1 + $0x1] ss:$4 sm:$0xff] %v291_v4  ;;  %v452_v31 = vld [vmem:[#allocation2 + $0x2] sm:$0x3f] }
  0x2f   : > { %v296_v9 = vld.sshfl [vmem:[#allocation1 + $0x8] sm:$0xff pattern:$0x73625140]  ;;  %v297_v10 = vld.sshfl [vmem:[#allocation1 + $0x10] sm:$0xff pattern:$0x73625140] }
  0x30   : > { %300 = vrot.lane.b32.xlu1 %v296_v9, %s1432_s25  ;;  %v295_v11 = vld.sshfl [vmem:[#allocation1] sm:$0xff pattern:$0x73625140]  ;;  %302 = vrot.lane.b32.xlu2 %v297_v10, %s1432_s25 }
  0x31   : > { %317 = vst [vmem:[#allocation1] ss:$4 sm:$0xff] %v311_v8 }
  0x38   : > { %v319_v13 = vld.sshfl [vmem:[#allocation1 + $0x8] sm:$0xff pattern:$0x73625140]  ;;  %v318_v14 = vld.sshfl [vmem:[#allocation1] sm:$0xff pattern:$0x73625140] }
  0x39   : > { %323 = vrot.lane.b32.xlu0 %v319_v13, %s1433_s26  ;;  %v320_v15 = vld.sshfl [vmem:[#allocation1 + $0x10] sm:$0xff pattern:$0x73625140]  ;;  %321 = vrot.lane.b32.xlu2 %v318_v14, %s1433_s26 }
  0x3a   : > { %325 = vrot.lane.b32.xlu1 %v320_v15, %s1433_s26  ;;  %344 = vst [vmem:[#allocation1] ss:$4 sm:$0xff] %v342_v12 }
  0x41   : > { %v347_v17 = vld.sshfl [vmem:[#allocation1 + $0x10] sm:$0xff pattern:$0x73625140]  ;;  %v345_v18 = vld.sshfl [vmem:[#allocation1] sm:$0xff pattern:$0x73625140] }
  0x42   : > { %352 = vrot.lane.b32.xlu0 %v347_v17, %s1434_s27  ;;  %v346_v19 = vld.sshfl [vmem:[#allocation1 + $0x8] sm:$0xff pattern:$0x73625140] }
  0x43   : > { %350 = vrot.lane.b32.xlu2 %v346_v19, %s1434_s27  ;;  %371 = vst [vmem:[#allocation1] ss:$4 sm:$0xff] %v369_v16 }
  0x4a   : > { %348 = vrot.lane.b32.xlu0 %v345_v18, %s1434_s27  ;;  %v372_v21 = vld.sshfl [vmem:[#allocation1] sm:$0xff pattern:$0x73625140]  ;;  %v373_v22 = vld.sshfl [vmem:[#allocation1 + $0x8] sm:$0xff pattern:$0x73625140] }
  0x4b   : > { %380 = vst [vmem:[#allocation1] ss:$4 sm:$0xff] %v378_v20 }
  0x4c   : > { %376 = vst [vmem:[#allocation3 + $0x8] sm:$0x3] %v372_v21 }
  0x4d   : > { %377 = vst [vmem:[#allocation3] sm:$0x3] %v373_v22 }
  0x52   : > { %v382_v24 = vld.sshfl [vmem:[#allocation1 + $0x8] sm:$0xff pattern:$0x73625140]  ;;  %v381_v25 = vld.sshfl [vmem:[#allocation1] sm:$0xff pattern:$0x73625140] }
  0x53   : > { %386 = vrot.lane.b32.xlu0 %v382_v24, %s1435_s28  ;;  %384 = vrot.lane.b32.xlu1 %v381_v25, %s1435_s28  ;;  %v383_v26 = vld.sshfl [vmem:[#allocation1 + $0x10] sm:$0xff pattern:$0x73625140] }
  0x54   : > { %407 = vst [vmem:[#allocation1] ss:$4 sm:$0xff] %v405_v23 }
  0x5b   : > { %388 = vrot.lane.b32.xlu0 %v383_v26, %s1435_s28  ;;  %v409_v28 = vld.sshfl [vmem:[#allocation1 + $0x8] sm:$0xff pattern:$0x73625140]  ;;  %v408_v29 = vld.sshfl [vmem:[#allocation1] sm:$0xff pattern:$0x73625140] }
  0x5c   : > { %413 = vrot.lane.b32.xlu1 %v409_v28, %s1436_s29  ;;  %411 = vrot.lane.b32.xlu2 %v408_v29, %s1436_s29  ;;  %v410_v30 = vld.sshfl [vmem:[#allocation1 + $0x10] sm:$0xff pattern:$0x73625140] }
  0x5d   : > { %435 = vst [vmem:[#allocation1 + $0x3] ss:$4 sm:$0xff] %v432_v27 }
  0x64   : > { %415 = vrot.lane.b32.xlu1 %v410_v30, %s1436_s29  ;;  %v438_v32 = vld.sshfl [vmem:[#allocation1 + $0x10] sm:$0xff pattern:$0x73625140]  ;;  %v436_v33 = vld.sshfl [vmem:[#allocation1] sm:$0xff pattern:$0x73625140] }
  0x65   : > { %443 = vrot.lane.b32.xlu2 %v438_v32, %s1437_s30  ;;  %v437_v34 = vld.sshfl [vmem:[#allocation1 + $0x8] sm:$0xff pattern:$0x73625140] }
  0x66   : > { %454 = vst [vmem:[#allocation1] ss:$4 sm:$0xff] %v452_v31 }
  0x6c   : > { %441 = vrot.lane.b32.xlu1 %v437_v34, %s1437_s30 }
  0x6d   : > { %v456_v35 = vld.sshfl [vmem:[#allocation1 + $0x8] sm:$0xff pattern:$0x73625140]  ;;  %v455_v36 = vld.sshfl [vmem:[#allocation1] sm:$0xff pattern:$0x73625140] }
  0x6e   : > { %460 = vrot.lane.b32.xlu2 %v456_v35, %s1438_s6  ;;  %458 = vrot.lane.b32.xlu0 %v455_v36, %s1438_s6  ;;  %v457_v37 = vld.sshfl [vmem:[#allocation1 + $0x10] sm:$0xff pattern:$0x73625140] }
  0x74   : > { %276 = vrot.lane.b32.xlu1 %v1491_v6, %s1431_s24 }
  0x76   : > { %462 = vrot.lane.b32.xlu2 %v457_v37, %s1438_s6  ;;  %439 = vrot.lane.b32.xlu0 %v436_v33, %s1437_s30 }
  0x7e   : > { %298 = vrot.lane.b32.xlu2 %v295_v11, %s1432_s25 }
  0x8a   : > { %v303_v42 = vpop.permute.xlu2 %302 }
  0x93   : > { %v322_v48 = vpop.permute.xlu2 %321 }
  0x99   : > { %v281_v43 = vpop.permute.xlu1 %280 }
  0x9a   : > { %v1522_v45 = vpop.permute.xlu0 %278 }
  0x9b   : > { %v284_v46 = vsel %vm282_vm0, %v1522_v45, %v281_v43 }
  0x9c   : > { %v288_v47 = vsel %vm1518_vm1, %v284_v46, 0.0 }
  0x9d   : > { %290 = vst [vmem:[#allocation3 + $0x10] sm:$0x3] %v288_v47  ;;  %v351_v56 = vpop.permute.xlu2 %350  ;;  %v473_v47 = vld [vmem:[%s1839_s1] sm:$0x3] }
  0xa2   : > { %v301_v49 = vpop.permute.xlu1 %300 }
  0xa3   : > { %v306_v50 = vsel %vm304_vm2, %v301_v49, %v303_v42 }
  0xa4   : > { %310 = vst [vmem:[#allocation3 + $0x10] sm:$0xc] %v306_v50 }
  0xab   : > { %v324_v53 = vpop.permute.xlu0 %323 }
  0xac   : > { %v328_v55 = vsel %vm327_vm3, %v322_v48, %v324_v53  ;;  %v326_v57 = vpop.permute.xlu1 %325 }
  0xad   : > { %v332_v58 = vsel %vm1529_vm4, %v328_v55, 0.0  ;;  %v329_v59 = vsel %vm327_vm3, %v324_v53, %v326_v57 }
  0xae   : > { %v336_v60 = vrot.slane %v332_v58, 4  ;;  %v333_v61 = vsel %vm1533_vm5, %v329_v59, 0.0 }
  0xaf   : > { %v337_v62 = vrot.slane %v333_v61, 4 }
  0xb0   : > { %340 = vst [vmem:[#allocation3 + $0x28] sm:$0x30] %v336_v60 }
  0xb1   : > { %341 = vst [vmem:[#allocation3 + $0x10] sm:$0x30] %v337_v62 }
  0xb4   : > { %v353_v63 = vpop.permute.xlu0 %352 }
  0xb5   : > { %v356_v0 = vsel %vm354_vm6, %v351_v56, %v353_v63 }
  0xb6   : > { %v360_v2 = vsel %vm1518_vm1, %v356_v0, 0.0  ;;  %v412_v3 = vpop.permute.xlu2 %411 }
  0xb7   : > { %v364_v4 = vrot.slane %v360_v2, 2 }
  0xb9   : > { %368 = vst [vmem:[#allocation3 + $0x10] sm:$0xc0] %v364_v4 }
  0xbc   : > { %v349_v6 = vpop.permute.xlu0 %348 }
  0xbd   : > { %v355_v7 = vsel %vm354_vm6, %v349_v6, %v351_v56 }
  0xbe   : > { %v359_v8 = vsel %vm1546_vm7, %v355_v7, 0.0 }
  0xbf   : > { %v363_v9 = vrot.slane %v359_v8, 2  ;;  %v444_v10 = vpop.permute.xlu2 %443 }
  0xc0   : > { %v475_v48 = vld [vmem:[#allocation3 + $0x10] sm:$0xff] }
  0xc1   : > { %367 = vst [vmem:[#allocation3 + $0x28] sm:$0xc0] %v363_v9 }
  0xc5   : > { %v387_v11 = vpop.permute.xlu0 %386  ;;  %v385_v12 = vpop.permute.xlu1 %384 }
  0xc6   : > { %v391_v13 = vsel %vm390_vm8, %v385_v12, %v387_v11 }
  0xc7   : > { %v395_v14 = vsel %vm1529_vm4, %v391_v13, 0.0 }
  0xc8   : > { %v399_v15 = vrot.slane %v395_v14, 6  ;;  %v461_v16 = vpop.permute.xlu2 %460 }
  0xca   : > { %403 = vst [vmem:[#allocation3 + $0x8] sm:$0xc] %v399_v15 }
  0xcd   : > { %v389_v17 = vpop.permute.xlu0 %388 }
  0xce   : > { %v392_v18 = vsel %vm390_vm8, %v387_v11, %v389_v17  ;;  %v414_v19 = vpop.permute.xlu1 %413 }
  0xcf   : > { %v396_v20 = vsel %vm1533_vm5, %v392_v18, 0.0  ;;  %v418_v21 = vsel %vm417_vm9, %v412_v3, %v414_v19 }
  0xd0   : > { %v400_v22 = vrot.slane %v396_v20, 6  ;;  %v422_v23 = vsel %vm1546_vm7, %v418_v21, 0.0  ;;  %v463_v24 = vpop.permute.xlu2 %462 }
  0xd1   : > { %v426_v25 = vrot.slane %v422_v23, 4  ;;  %v466_v26 = vsel %vm464_vm10, %v461_v16, %v463_v24 }
  0xd2   : > { %404 = vst [vmem:[#allocation3] sm:$0xc] %v400_v22  ;;  %v470_v27 = vsel %vm1533_vm5, %v466_v26, 0.0 }
  0xd3   : > { %430 = vst [vmem:[#allocation3 + $0x8] sm:$0x30] %v426_v25 }
  0xd4   : > { %472 = vst [vmem:[#allocation3 + $0x20] sm:$0x3] %v470_v27 }
  0xd6   : > { %v416_v28 = vpop.permute.xlu1 %415 }
  0xd7   : > { %v419_v29 = vsel %vm417_vm9, %v414_v19, %v416_v28 }
  0xd8   : > { %v423_v30 = vsel %vm1518_vm1, %v419_v29, 0.0  ;;  %v299_v31 = vpop.permute.xlu2 %298 }
  0xd9   : > { %v427_v32 = vrot.slane %v423_v30, 4  ;;  %v305_v33 = vsel %vm304_vm2, %v299_v31, %v301_v49 }
  0xda   : > { %309 = vst [vmem:[#allocation3 + $0x28] sm:$0xc] %v305_v33 }
  0xdb   : > { %431 = vst [vmem:[#allocation3] sm:$0x30] %v427_v32  ;;  %v479_v34 = vld [vmem:[#allocation3 + $0x20] sm:$0x3] }
  0xdc   : > { %1379 = vmatpush.msk.msra.mxu1 %vm484_vm11, %v479_v34 }
  0xde   : > { %v442_v35 = vpop.permute.xlu1 %441 }
  0xdf   : > { %v447_v36 = vsel %vm445_vm12, %v442_v35, %v444_v10 }
  0xe0   : > { %451 = vst [vmem:[#allocation3] sm:$0xc0] %v447_v36  ;;  %v459_v37 = vpop.permute.xlu0 %458 }
  0xe1   : > { %v465_v38 = vsel %vm464_vm10, %v459_v37, %v461_v16 }
  0xe2   : > { %v469_v39 = vsel %vm1529_vm4, %v465_v38, 0.0 }
  0xe3   : > { %471 = vst [vmem:[#allocation3 + $0x18] sm:$0x3] %v469_v39 }
  0xe6   : > { %v277_v40 = vpop.permute.xlu1 %276 }
  0xe7   : > { %v477_v41 = vld [vmem:[#allocation3] sm:$0xff]  ;;  %v283_v42 = vsel %vm282_vm0, %v277_v40, %v1522_v45 }
  0xe8   : > { %v287_v43 = vsel %vm1546_vm7, %v283_v42, 0.0  ;;  %v440_v46 = vpop.permute.xlu0 %439  ;;  %525 = vmatpush.msra.mxu1 %v477_v41 }
  0xe9   : > { %289 = vst [vmem:[#allocation3 + $0x28] sm:$0x3] %v287_v43  ;;  %v446_v49 = vsel %vm445_vm12, %v440_v46, %v442_v35 }
  0xea   : > { %450 = vst [vmem:[#allocation3 + $0x8] sm:$0xc0] %v446_v49  ;;  %v478_v50 = vld [vmem:[#allocation3 + $0x18] sm:$0x3]  ;;  %526 = vmatpush.msra.mxu1 %v475_v48 }
  0xeb   : > { %1377 = vmatpush.msk.msra.mxu0 %vm484_vm11, %v478_v50  ;;  %1380 = vmatmul.msk.f32.vlgmr.msra.gmra.mxu1 %vm480_vm13, %v473_v47 }
  0xf0   : > { %v474_v45 = vld [vmem:[#allocation3 + $0x28] sm:$0xff] }
  0xf1   : > { %v476_v51 = vld [vmem:[#allocation3 + $0x8] sm:$0xff] }
  0xf2   : > { %505 = vmatpush.msra.mxu0 %v476_v51 }
  0xf4   : > { %506 = vmatpush.msra.mxu0 %v474_v45 }
  0xf5   : > { %1378 = vmatmul.msk.f32.vlgmr.msra.gmra.mxu0 %vm480_vm13, %v473_v47 }
 0x168   : > { %v528_v53 = vpop.f32.mrf.mxu1 }
 0x169   : > { %v532_v55 = vmax.f32 %v528_v53, 0.0 }
 0x16b   : > { %v535_v56 = vrot.slane %v532_v55, 6 }
 0x172   : > { %v508_v57 = vpop.f32.mrf.mxu0 }
 0x173   : > { %v531_v58 = vmax.f32 %v508_v57, 0.0 }
 0x175   : > { %v536_v59 = vsel %vm484_vm11, %v531_v58, %v535_v56 }
 0x176   : > { %538 = vst [vmem:[#allocation2 + $0x2] sm:$0xf] %v536_v59 }
 0x17d   : > { %v539_v60 = vld [vmem:[#allocation2] sm:$0x3f] }
 0x17e   : > { %541 = vst [vmem:[#allocation1] ss:$4 sm:$0xff] %v539_v60  ;;  %v559_v63 = vld [vmem:[#allocation2] sm:$0x3f] }
 0x17f   : > { %v578_v4 = vld [vmem:[#allocation2] sm:$0x3f] }
 0x180   : > { %v604_v9 = vld [vmem:[#allocation2] sm:$0x3f] }
 0x181   : > { %v630_v13 = vld [vmem:[#allocation2 + $0x2] sm:$0xf] }
 0x182   : > { %v639_v17 = vld [vmem:[#allocation2 + $0x2] sm:$0x3f] }
 0x183   : > { %v665_v20 = vld [vmem:[#allocation2 + $0x2] sm:$0x3f] }
 0x184   : > { %v691_v24 = vld [vmem:[#allocation2 + $0x2] sm:$0x3f] }
 0x185   : > { %v544_v61 = vld.sshfl [vmem:[#allocation1 + $0x10] sm:$0xff pattern:$0x73625140]  ;;  %v1586_v62 = vld.sshfl [vmem:[#allocation1] sm:$0xff pattern:$0x73625140] }
 0x186   : > { %549 = vrot.lane.b32.xlu1 %v544_v61, %s1431_s24  ;;  %v543_v0 = vld.sshfl [vmem:[#allocation1 + $0x8] sm:$0xff pattern:$0x73625140] }
 0x187   : > { %562 = vst [vmem:[#allocation1 + $0x1] ss:$4 sm:$0xff] %v559_v63  ;;  %547 = vrot.lane.b32.xlu0 %v543_v0, %s1431_s24  ;;  %v710_v28 = vld [vmem:[#allocation2 + $0x2] sm:$0x3f] }
 0x18e   : > { %v563_v2 = vld.sshfl [vmem:[#allocation1] sm:$0xff pattern:$0x73625140]  ;;  %v565_v3 = vld.sshfl [vmem:[#allocation1 + $0x10] sm:$0xff pattern:$0x73625140] }
 0x18f   : > { %570 = vrot.lane.b32.xlu2 %v565_v3, %s1432_s25  ;;  %v564_v6 = vld.sshfl [vmem:[#allocation1 + $0x8] sm:$0xff pattern:$0x73625140] }
 0x190   : > { %568 = vrot.lane.b32.xlu1 %v564_v6, %s1432_s25  ;;  %580 = vst [vmem:[#allocation1] ss:$4 sm:$0xff] %v578_v4 }
 0x197   : > { %v583_v7 = vld.sshfl [vmem:[#allocation1 + $0x10] sm:$0xff pattern:$0x73625140]  ;;  %v582_v8 = vld.sshfl [vmem:[#allocation1 + $0x8] sm:$0xff pattern:$0x73625140] }
 0x198   : > { %588 = vrot.lane.b32.xlu1 %v583_v7, %s1433_s26  ;;  %586 = vrot.lane.b32.xlu0 %v582_v8, %s1433_s26  ;;  %v581_v10 = vld.sshfl [vmem:[#allocation1] sm:$0xff pattern:$0x73625140] }
 0x199   : > { %584 = vrot.lane.b32.xlu2 %v581_v10, %s1433_s26  ;;  %606 = vst [vmem:[#allocation1] ss:$4 sm:$0xff] %v604_v9 }
 0x1a0   : > { %v609_v11 = vld.sshfl [vmem:[#allocation1 + $0x10] sm:$0xff pattern:$0x73625140]  ;;  %v608_v12 = vld.sshfl [vmem:[#allocation1 + $0x8] sm:$0xff pattern:$0x73625140] }
 0x1a1   : > { %614 = vrot.lane.b32.xlu0 %v609_v11, %s1434_s27  ;;  %612 = vrot.lane.b32.xlu2 %v608_v12, %s1434_s27  ;;  %v607_v14 = vld.sshfl [vmem:[#allocation1] sm:$0xff pattern:$0x73625140] }
 0x1a2   : > { %632 = vst [vmem:[#allocation1] ss:$4 sm:$0xff] %v630_v13 }
 0x1a9   : > { %610 = vrot.lane.b32.xlu0 %v607_v14, %s1434_s27  ;;  %v633_v15 = vld.sshfl [vmem:[#allocation1] sm:$0xff pattern:$0x73625140]  ;;  %v634_v16 = vld.sshfl [vmem:[#allocation1 + $0x8] sm:$0xff pattern:$0x73625140] }
 0x1aa   : > { %637 = vst [vmem:[#allocation3 + $0x8] sm:$0x3] %v633_v15 }
 0x1ab   : > { %638 = vst [vmem:[#allocation3] sm:$0x3] %v634_v16 }
 0x1ac   : > { %641 = vst [vmem:[#allocation1] ss:$4 sm:$0xff] %v639_v17 }
 0x1b3   : > { %v644_v18 = vld.sshfl [vmem:[#allocation1 + $0x10] sm:$0xff pattern:$0x73625140]  ;;  %v643_v19 = vld.sshfl [vmem:[#allocation1 + $0x8] sm:$0xff pattern:$0x73625140] }
 0x1b4   : > { %649 = vrot.lane.b32.xlu1 %v644_v18, %s1435_s28  ;;  %647 = vrot.lane.b32.xlu0 %v643_v19, %s1435_s28  ;;  %v642_v21 = vld.sshfl [vmem:[#allocation1] sm:$0xff pattern:$0x73625140] }
 0x1b5   : > { %667 = vst [vmem:[#allocation1] ss:$4 sm:$0xff] %v665_v20 }
 0x1bc   : > { %645 = vrot.lane.b32.xlu1 %v642_v21, %s1435_s28  ;;  %v670_v22 = vld.sshfl [vmem:[#allocation1 + $0x10] sm:$0xff pattern:$0x73625140]  ;;  %v668_v23 = vld.sshfl [vmem:[#allocation1] sm:$0xff pattern:$0x73625140] }
 0x1bd   : > { %675 = vrot.lane.b32.xlu0 %v670_v22, %s1436_s29  ;;  %v669_v25 = vld.sshfl [vmem:[#allocation1 + $0x8] sm:$0xff pattern:$0x73625140] }
 0x1be   : > { %694 = vst [vmem:[#allocation1 + $0x3] ss:$4 sm:$0xff] %v691_v24  ;;  %673 = vrot.lane.b32.xlu2 %v669_v25, %s1436_s29 }
 0x1c5   : > { %v695_v26 = vld.sshfl [vmem:[#allocation1] sm:$0xff pattern:$0x73625140]  ;;  %v696_v27 = vld.sshfl [vmem:[#allocation1 + $0x8] sm:$0xff pattern:$0x73625140] }
 0x1c6   : > { %671 = vrot.lane.b32.xlu2 %v668_v23, %s1436_s29  ;;  %700 = vrot.lane.b32.xlu1 %v696_v27, %s1437_s30  ;;  %v697_v29 = vld.sshfl [vmem:[#allocation1 + $0x10] sm:$0xff pattern:$0x73625140] }
 0x1c7   : > { %712 = vst [vmem:[#allocation1] ss:$4 sm:$0xff] %v710_v28 }
 0x1ce   : > { %702 = vrot.lane.b32.xlu2 %v697_v29, %s1437_s30  ;;  %v714_v30 = vld.sshfl [vmem:[#allocation1 + $0x8] sm:$0xff pattern:$0x73625140]  ;;  %v713_v31 = vld.sshfl [vmem:[#allocation1] sm:$0xff pattern:$0x73625140] }
 0x1cf   : > { %718 = vrot.lane.b32.xlu1 %v714_v30, %s1438_s6  ;;  %716 = vrot.lane.b32.xlu0 %v713_v31, %s1438_s6  ;;  %v715_v32 = vld.sshfl [vmem:[#allocation1 + $0x10] sm:$0xff pattern:$0x73625140] }
 0x1d6   : > { %720 = vrot.lane.b32.xlu2 %v715_v32, %s1438_s6 }
 0x1d7   : > { %545 = vrot.lane.b32.xlu1 %v1586_v62, %s1431_s24  ;;  %698 = vrot.lane.b32.xlu0 %v695_v26, %s1437_s30 }
 0x1de   : > { %566 = vrot.lane.b32.xlu2 %v563_v2, %s1432_s25 }
 0x1e9   : > { %v571_v37 = vpop.permute.xlu2 %570 }
 0x1f3   : > { %v585_v40 = vpop.permute.xlu2 %584 }
 0x1f8   : > { %v550_v33 = vpop.permute.xlu1 %549 }
 0x1f9   : > { %v1613_v34 = vpop.permute.xlu0 %547 }
 0x1fa   : > { %v552_v35 = vsel %vm282_vm0, %v1613_v34, %v550_v33 }
 0x1fb   : > { %v556_v36 = vsel %vm1518_vm1, %v552_v35, 0.0  ;;  %v613_v45 = vpop.permute.xlu2 %612 }
 0x1fc   : > { %558 = vst [vmem:[#allocation3 + $0x10] sm:$0x3] %v556_v36 }
 0x202   : > { %v569_v38 = vpop.permute.xlu1 %568 }
 0x203   : > { %v573_v39 = vsel %vm304_vm2, %v569_v38, %v571_v37 }
 0x204   : > { %577 = vst [vmem:[#allocation3 + $0x10] sm:$0xc] %v573_v39 }
 0x20a   : > { %v589_v41 = vpop.permute.xlu1 %588  ;;  %v587_v42 = vpop.permute.xlu0 %586 }
 0x20b   : > { %v590_v43 = vsel %vm327_vm3, %v585_v40, %v587_v42  ;;  %v591_v46 = vsel %vm327_vm3, %v587_v42, %v589_v41 }
 0x20c   : > { %v594_v47 = vsel %vm1529_vm4, %v590_v43, 0.0  ;;  %v595_v48 = vsel %vm1533_vm5, %v591_v46, 0.0 }
 0x20d   : > { %v598_v49 = vrot.slane %v594_v47, 4  ;;  %v599_v50 = vrot.slane %v595_v48, 4  ;;  %v258_v47 = vld [vmem:[%s1485_s23] sm:$0x33] }
 0x20f   : > { %602 = vst [vmem:[#allocation3 + $0x28] sm:$0x30] %v598_v49 }
 0x210   : > { %603 = vst [vmem:[#allocation3 + $0x10] sm:$0x30] %v599_v50 }
 0x213   : > { %v615_v51 = vpop.permute.xlu0 %614 }
 0x214   : > { %v617_v53 = vsel %vm354_vm6, %v613_v45, %v615_v51 }
 0x215   : > { %v621_v55 = vsel %vm1518_vm1, %v617_v53, 0.0 }
 0x216   : > { %v625_v56 = vrot.slane %v621_v55, 2 }
 0x218   : > { %629 = vst [vmem:[#allocation3 + $0x10] sm:$0xc0] %v625_v56  ;;  %v674_v57 = vpop.permute.xlu2 %673 }
 0x21b   : > { %v611_v58 = vpop.permute.xlu0 %610 }
 0x21c   : > { %v616_v59 = vsel %vm354_vm6, %v611_v58, %v613_v45 }
 0x21d   : > { %v620_v60 = vsel %vm1546_vm7, %v616_v59, 0.0 }
 0x21e   : > { %v624_v61 = vrot.slane %v620_v60, 2 }
 0x220   : > { %628 = vst [vmem:[#allocation3 + $0x28] sm:$0xc0] %v624_v61  ;;  %v672_v62 = vpop.permute.xlu2 %671 }
 0x221   : > { %v677_v63 = vsel %vm417_vm9, %v672_v62, %v674_v57 }
 0x222   : > { %v681_v0 = vsel %vm1546_vm7, %v677_v63, 0.0 }
 0x223   : > { %v685_v2 = vrot.slane %v681_v0, 4 }
 0x225   : > { %689 = vst [vmem:[#allocation3 + $0x8] sm:$0x30] %v685_v2 }
 0x226   : > { %v650_v3 = vpop.permute.xlu1 %649  ;;  %v648_v4 = vpop.permute.xlu0 %647 }
 0x227   : > { %v652_v6 = vsel %vm390_vm8, %v648_v4, %v650_v3 }
 0x228   : > { %v656_v7 = vsel %vm1533_vm5, %v652_v6, 0.0  ;;  %v703_v8 = vpop.permute.xlu2 %702 }
 0x229   : > { %v660_v9 = vrot.slane %v656_v7, 6 }
 0x22b   : > { %664 = vst [vmem:[#allocation3] sm:$0xc] %v660_v9 }
 0x22e   : > { %v646_v10 = vpop.permute.xlu1 %645 }
 0x22f   : > { %v651_v11 = vsel %vm390_vm8, %v646_v10, %v648_v4  ;;  %v676_v12 = vpop.permute.xlu0 %675 }
 0x230   : > { %v655_v13 = vsel %vm1529_vm4, %v651_v11, 0.0  ;;  %v678_v14 = vsel %vm417_vm9, %v674_v57, %v676_v12  ;;  %v721_v15 = vpop.permute.xlu2 %720 }
 0x231   : > { %v659_v16 = vrot.slane %v655_v13, 6  ;;  %v682_v17 = vsel %vm1518_vm1, %v678_v14, 0.0 }
 0x232   : > { %v686_v18 = vrot.slane %v682_v17, 4 }
 0x233   : > { %663 = vst [vmem:[#allocation3 + $0x8] sm:$0xc] %v659_v16 }
 0x234   : > { %690 = vst [vmem:[#allocation3] sm:$0x30] %v686_v18 }
 0x238   : > { %v701_v19 = vpop.permute.xlu1 %700  ;;  %v567_v20 = vpop.permute.xlu2 %566 }
 0x239   : > { %v705_v21 = vsel %vm445_vm12, %v701_v19, %v703_v8  ;;  %v572_v22 = vsel %vm304_vm2, %v567_v20, %v569_v38  ;;  %v730_v38 = vld [vmem:[%s1840_s2] sm:$0x3] }
 0x23a   : > { %709 = vst [vmem:[#allocation3] sm:$0xc0] %v705_v21 }
 0x23b   : > { %576 = vst [vmem:[#allocation3 + $0x28] sm:$0xc] %v572_v22 }
 0x241   : > { %v719_v23 = vpop.permute.xlu1 %718  ;;  %v717_v24 = vpop.permute.xlu0 %716  ;;  %v734_v37 = vld [vmem:[#allocation3] sm:$0xff] }
 0x242   : > { %v723_v25 = vsel %vm464_vm10, %v719_v23, %v721_v15  ;;  %v722_v26 = vsel %vm464_vm10, %v717_v24, %v719_v23 }
 0x243   : > { %v727_v27 = vsel %vm1533_vm5, %v723_v25, 0.0  ;;  %v726_v28 = vsel %vm1529_vm4, %v722_v26, 0.0 }
 0x244   : > { %729 = vst [vmem:[#allocation3 + $0x20] sm:$0x3] %v727_v27 }
 0x245   : > { %728 = vst [vmem:[#allocation3 + $0x18] sm:$0x3] %v726_v28 }
 0x249   : > { %v546_v29 = vpop.permute.xlu1 %545  ;;  %v699_v30 = vpop.permute.xlu0 %698 }
 0x24a   : > { %v551_v31 = vsel %vm282_vm0, %v546_v29, %v1613_v34  ;;  %v704_v32 = vsel %vm445_vm12, %v699_v30, %v701_v19  ;;  %v732_v34 = vld [vmem:[#allocation3 + $0x10] sm:$0xff] }
 0x24b   : > { %v555_v33 = vsel %vm1546_vm7, %v551_v31, 0.0  ;;  %708 = vst [vmem:[#allocation3 + $0x8] sm:$0xc0] %v704_v32  ;;  %v736_v35 = vld [vmem:[#allocation3 + $0x20] sm:$0x3] }
 0x24c   : > { %557 = vst [vmem:[#allocation3 + $0x28] sm:$0x3] %v555_v33  ;;  %v735_v36 = vld [vmem:[#allocation3 + $0x18] sm:$0x3]  ;;  %1383 = vmatpush.msk.msra.mxu3 %vm484_vm11, %v736_v35 }
 0x24d   : > { %1381 = vmatpush.msk.msra.mxu2 %vm484_vm11, %v735_v36 }
 0x24e   : > { %780 = vmatpush.msra.mxu3 %v734_v37 }
 0x250   : > { %781 = vmatpush.msra.mxu3 %v732_v34 }
 0x251   : > { %1384 = vmatmul.msk.f32.vlgmr.msra.gmra.mxu3 %vm480_vm13, %v730_v38 }
 0x252   : > { %v733_v39 = vld [vmem:[#allocation3 + $0x8] sm:$0xff] }
 0x253   : > { %760 = vmatpush.msra.mxu2 %v733_v39  ;;  %v731_v40 = vld [vmem:[#allocation3 + $0x28] sm:$0xff] }
 0x255   : > { %761 = vmatpush.msra.mxu2 %v731_v40 }
 0x256   : > { %1382 = vmatmul.msk.f32.vlgmr.msra.gmra.mxu2 %vm480_vm13, %v730_v38 }
 0x2d4   : > { %v783_v41 = vpop.f32.mrf.mxu3 }
 0x2d5   : > { %1414 = vtanh.f32 %v783_v41 }
 0x2d9   : > { %v763_v42 = vpop.f32.mrf.mxu2 }
 0x2da   : > { %1416 = vtanh.f32 %v763_v42 }
 0x2db   : > { %v1415_v43 = vpop.eup %1414 }
 0x2dc   : > { %v790_v46 = vrot.slane %v1415_v43, 4 }
 0x2e0   : > { %v1417_v48 = vpop.eup %1416 }
 0x2e1   : > { %v792_v49 = vsel %vm791_vm14, %v1417_v48, %v790_v46 }
 0x2e2   : > { %v794_v50 = vadd.f32 %v792_v49, %v258_v47 }
 0x2e4   : > { %v796_v45 = vrot.slane %v794_v50, 2  ;;  %1311 = vst [vmem:[%s1671_s13] sm:$0x33] %v794_v50 }
 0x2e6   : > { %v797_v51 = vsel %vm484_vm11, %v794_v50, %v796_v45 }
 0x2e7   : > { %799 = vst [vmem:[#allocation2 + $0x2] sm:$0xf] %v797_v51 }
 0x2ee   : > { %v800_v53 = vld [vmem:[#allocation2] sm:$0x3f] }
 0x2ef   : > { %802 = vst [vmem:[#allocation1] ss:$4 sm:$0xff] %v800_v53  ;;  %v820_v58 = vld [vmem:[#allocation2] sm:$0x3f] }
 0x2f0   : > { %v839_v62 = vld [vmem:[#allocation2] sm:$0x3f] }
 0x2f1   : > { %v865_v3 = vld [vmem:[#allocation2] sm:$0x3f] }
 0x2f2   : > { %v891_v8 = vld [vmem:[#allocation2 + $0x2] sm:$0xf] }
 0x2f3   : > { %v900_v9 = vld [vmem:[#allocation2 + $0x2] sm:$0x3f] }
 0x2f4   : > { %v926_v15 = vld [vmem:[#allocation2 + $0x2] sm:$0x3f] }
 0x2f5   : > { %v952_v19 = vld [vmem:[#allocation2 + $0x2] sm:$0x3f] }
 0x2f6   : > { %v1675_v55 = vld.sshfl [vmem:[#allocation1] sm:$0xff pattern:$0x73625140]  ;;  %v804_v56 = vld.sshfl [vmem:[#allocation1 + $0x8] sm:$0xff pattern:$0x73625140] }
 0x2f7   : > { %v805_v57 = vld.sshfl [vmem:[#allocation1 + $0x10] sm:$0xff pattern:$0x73625140]  ;;  %808 = vrot.lane.b32.xlu0 %v804_v56, %s1431_s24  ;;  %v971_v22 = vld [vmem:[#allocation2 + $0x2] sm:$0x3f] }
 0x2f8   : > { %823 = vst [vmem:[#allocation1 + $0x1] ss:$4 sm:$0xff] %v820_v58  ;;  %810 = vrot.lane.b32.xlu1 %v805_v57, %s1431_s24 }
 0x2ff   : > { %v824_v59 = vld.sshfl [vmem:[#allocation1] sm:$0xff pattern:$0x73625140]  ;;  %v825_v60 = vld.sshfl [vmem:[#allocation1 + $0x8] sm:$0xff pattern:$0x73625140] }
 0x300   : > { %v826_v61 = vld.sshfl [vmem:[#allocation1 + $0x10] sm:$0xff pattern:$0x73625140]  ;;  %829 = vrot.lane.b32.xlu1 %v825_v60, %s1432_s25 }
 0x301   : > { %841 = vst [vmem:[#allocation1] ss:$4 sm:$0xff] %v839_v62  ;;  %831 = vrot.lane.b32.xlu2 %v826_v61, %s1432_s25 }
 0x308   : > { %v842_v63 = vld.sshfl [vmem:[#allocation1] sm:$0xff pattern:$0x73625140]  ;;  %v843_v0 = vld.sshfl [vmem:[#allocation1 + $0x8] sm:$0xff pattern:$0x73625140] }
 0x309   : > { %v844_v2 = vld.sshfl [vmem:[#allocation1 + $0x10] sm:$0xff pattern:$0x73625140]  ;;  %847 = vrot.lane.b32.xlu0 %v843_v0, %s1433_s26  ;;  %845 = vrot.lane.b32.xlu2 %v842_v63, %s1433_s26 }
 0x30a   : > { %867 = vst [vmem:[#allocation1] ss:$4 sm:$0xff] %v865_v3  ;;  %849 = vrot.lane.b32.xlu1 %v844_v2, %s1433_s26 }
 0x311   : > { %v868_v4 = vld.sshfl [vmem:[#allocation1] sm:$0xff pattern:$0x73625140]  ;;  %v869_v6 = vld.sshfl [vmem:[#allocation1 + $0x8] sm:$0xff pattern:$0x73625140] }
 0x312   : > { %v870_v7 = vld.sshfl [vmem:[#allocation1 + $0x10] sm:$0xff pattern:$0x73625140]  ;;  %873 = vrot.lane.b32.xlu2 %v869_v6, %s1434_s27 }
 0x313   : > { %893 = vst [vmem:[#allocation1] ss:$4 sm:$0xff] %v891_v8  ;;  %875 = vrot.lane.b32.xlu0 %v870_v7, %s1434_s27 }
 0x31a   : > { %v894_v10 = vld.sshfl [vmem:[#allocation1] sm:$0xff pattern:$0x73625140]  ;;  %v895_v11 = vld.sshfl [vmem:[#allocation1 + $0x8] sm:$0xff pattern:$0x73625140] }
 0x31b   : > { %902 = vst [vmem:[#allocation1] ss:$4 sm:$0xff] %v900_v9  ;;  %871 = vrot.lane.b32.xlu0 %v868_v4, %s1434_s27 }
 0x31c   : > { %898 = vst [vmem:[#allocation3 + $0x8] sm:$0x3] %v894_v10 }
 0x31d   : > { %899 = vst [vmem:[#allocation3] sm:$0x3] %v895_v11 }
 0x322   : > { %v903_v12 = vld.sshfl [vmem:[#allocation1] sm:$0xff pattern:$0x73625140]  ;;  %v904_v13 = vld.sshfl [vmem:[#allocation1 + $0x8] sm:$0xff pattern:$0x73625140] }
 0x323   : > { %v905_v14 = vld.sshfl [vmem:[#allocation1 + $0x10] sm:$0xff pattern:$0x73625140]  ;;  %908 = vrot.lane.b32.xlu0 %v904_v13, %s1435_s28 }
 0x324   : > { %928 = vst [vmem:[#allocation1] ss:$4 sm:$0xff] %v926_v15  ;;  %910 = vrot.lane.b32.xlu1 %v905_v14, %s1435_s28 }
 0x32b   : > { %v929_v16 = vld.sshfl [vmem:[#allocation1] sm:$0xff pattern:$0x73625140]  ;;  %v930_v17 = vld.sshfl [vmem:[#allocation1 + $0x8] sm:$0xff pattern:$0x73625140] }
 0x32c   : > { %v931_v18 = vld.sshfl [vmem:[#allocation1 + $0x10] sm:$0xff pattern:$0x73625140]  ;;  %906 = vrot.lane.b32.xlu1 %v903_v12, %s1435_s28  ;;  %934 = vrot.lane.b32.xlu2 %v930_v17, %s1436_s29 }
 0x32d   : > { %955 = vst [vmem:[#allocation1 + $0x3] ss:$4 sm:$0xff] %v952_v19  ;;  %936 = vrot.lane.b32.xlu0 %v931_v18, %s1436_s29 }
 0x334   : > { %v956_v20 = vld.sshfl [vmem:[#allocation1] sm:$0xff pattern:$0x73625140]  ;;  %932 = vrot.lane.b32.xlu2 %v929_v16, %s1436_s29  ;;  %v957_v21 = vld.sshfl [vmem:[#allocation1 + $0x8] sm:$0xff pattern:$0x73625140] }
 0x335   : > { %961 = vrot.lane.b32.xlu1 %v957_v21, %s1437_s30  ;;  %v958_v23 = vld.sshfl [vmem:[#allocation1 + $0x10] sm:$0xff pattern:$0x73625140] }
 0x336   : > { %973 = vst [vmem:[#allocation1] ss:$4 sm:$0xff] %v971_v22 }
 0x33c   : > { %963 = vrot.lane.b32.xlu2 %v958_v23, %s1437_s30 }
 0x33d   : > { %v975_v24 = vld.sshfl [vmem:[#allocation1 + $0x8] sm:$0xff pattern:$0x73625140]  ;;  %v974_v25 = vld.sshfl [vmem:[#allocation1] sm:$0xff pattern:$0x73625140] }
 0x33e   : > { %979 = vrot.lane.b32.xlu1 %v975_v24, %s1438_s6  ;;  %977 = vrot.lane.b32.xlu0 %v974_v25, %s1438_s6  ;;  %v976_v26 = vld.sshfl [vmem:[#allocation1 + $0x10] sm:$0xff pattern:$0x73625140] }
 0x344   : > { %981 = vrot.lane.b32.xlu2 %v976_v26, %s1438_s6 }
 0x346   : > { %806 = vrot.lane.b32.xlu1 %v1675_v55, %s1431_s24  ;;  %959 = vrot.lane.b32.xlu0 %v956_v20, %s1437_s30 }
 0x34c   : > { %827 = vrot.lane.b32.xlu2 %v824_v59, %s1432_s25 }
 0x35b   : > { %v832_v28 = vpop.permute.xlu2 %831 }
 0x363   : > { %v846_v35 = vpop.permute.xlu2 %845 }
 0x369   : > { %v1702_v27 = vpop.permute.xlu0 %808 }
 0x36a   : > { %v811_v29 = vpop.permute.xlu1 %810 }
 0x36b   : > { %v813_v30 = vsel %vm282_vm0, %v1702_v27, %v811_v29 }
 0x36c   : > { %v817_v31 = vsel %vm1518_vm1, %v813_v30, 0.0  ;;  %v874_v40 = vpop.permute.xlu2 %873 }
 0x36d   : > { %819 = vst [vmem:[#allocation3 + $0x10] sm:$0x3] %v817_v31 }
 0x372   : > { %v830_v32 = vpop.permute.xlu1 %829 }
 0x373   : > { %v834_v33 = vsel %vm304_vm2, %v830_v32, %v832_v28 }
 0x374   : > { %838 = vst [vmem:[#allocation3 + $0x10] sm:$0xc] %v834_v33 }
 0x37b   : > { %v848_v36 = vpop.permute.xlu0 %847 }
 0x37c   : > { %v850_v37 = vpop.permute.xlu1 %849  ;;  %v851_v38 = vsel %vm327_vm3, %v846_v35, %v848_v36 }
 0x37d   : > { %v852_v34 = vsel %vm327_vm3, %v848_v36, %v850_v37  ;;  %v855_v39 = vsel %vm1529_vm4, %v851_v38, 0.0 }
 0x37e   : > { %v856_v41 = vsel %vm1533_vm5, %v852_v34, 0.0  ;;  %v859_v42 = vrot.slane %v855_v39, 4 }
 0x37f   : > { %v860_v43 = vrot.slane %v856_v41, 4 }
 0x380   : > { %863 = vst [vmem:[#allocation3 + $0x28] sm:$0x30] %v859_v42 }
 0x381   : > { %864 = vst [vmem:[#allocation3 + $0x10] sm:$0x30] %v860_v43 }
 0x385   : > { %v876_v46 = vpop.permute.xlu0 %875 }
 0x386   : > { %v878_v47 = vsel %vm354_vm6, %v874_v40, %v876_v46  ;;  %v935_v48 = vpop.permute.xlu2 %934 }
 0x387   : > { %v882_v49 = vsel %vm1518_vm1, %v878_v47, 0.0 }
 0x388   : > { %v886_v50 = vrot.slane %v882_v49, 2 }
 0x38a   : > { %890 = vst [vmem:[#allocation3 + $0x10] sm:$0xc0] %v886_v50 }
 0x38d   : > { %v872_v45 = vpop.permute.xlu0 %871 }
 0x38e   : > { %v877_v51 = vsel %vm354_vm6, %v872_v45, %v874_v40  ;;  %v933_v53 = vpop.permute.xlu2 %932 }
 0x38f   : > { %v881_v55 = vsel %vm1546_vm7, %v877_v51, 0.0  ;;  %v938_v56 = vsel %vm417_vm9, %v933_v53, %v935_v48 }
 0x390   : > { %v885_v57 = vrot.slane %v881_v55, 2  ;;  %v942_v58 = vsel %vm1546_vm7, %v938_v56, 0.0 }
 0x391   : > { %v946_v59 = vrot.slane %v942_v58, 4 }
 0x392   : > { %889 = vst [vmem:[#allocation3 + $0x28] sm:$0xc0] %v885_v57 }
 0x393   : > { %950 = vst [vmem:[#allocation3 + $0x8] sm:$0x30] %v946_v59 }
 0x395   : > { %v909_v60 = vpop.permute.xlu0 %908 }
 0x396   : > { %v911_v61 = vpop.permute.xlu1 %910  ;;  %v964_v62 = vpop.permute.xlu2 %963 }
 0x397   : > { %v913_v63 = vsel %vm390_vm8, %v909_v60, %v911_v61 }
 0x398   : > { %v917_v0 = vsel %vm1533_vm5, %v913_v63, 0.0 }
 0x399   : > { %v921_v2 = vrot.slane %v917_v0, 6 }
 0x39b   : > { %925 = vst [vmem:[#allocation3] sm:$0xc] %v921_v2 }
 0x39e   : > { %v907_v3 = vpop.permute.xlu1 %906  ;;  %v982_v4 = vpop.permute.xlu2 %981 }
 0x39f   : > { %v912_v6 = vsel %vm390_vm8, %v907_v3, %v909_v60  ;;  %v937_v7 = vpop.permute.xlu0 %936 }
 0x3a0   : > { %v916_v8 = vsel %vm1529_vm4, %v912_v6, 0.0  ;;  %v939_v9 = vsel %vm417_vm9, %v935_v48, %v937_v7 }
 0x3a1   : > { %v920_v10 = vrot.slane %v916_v8, 6  ;;  %v943_v11 = vsel %vm1518_vm1, %v939_v9, 0.0 }
 0x3a2   : > { %v947_v12 = vrot.slane %v943_v11, 4 }
 0x3a3   : > { %924 = vst [vmem:[#allocation3 + $0x8] sm:$0xc] %v920_v10 }
 0x3a4   : > { %951 = vst [vmem:[#allocation3] sm:$0x30] %v947_v12 }
 0x3a6   : > { %v828_v13 = vpop.permute.xlu2 %827 }
 0x3a7   : > { %v962_v14 = vpop.permute.xlu1 %961  ;;  %v833_v15 = vsel %vm304_vm2, %v828_v13, %v830_v32  ;;  %v991_v32 = vld [vmem:[%s1841_s3] sm:$0x3] }
 0x3a8   : > { %v966_v16 = vsel %vm445_vm12, %v962_v14, %v964_v62  ;;  %837 = vst [vmem:[#allocation3 + $0x28] sm:$0xc] %v833_v15 }
 0x3a9   : > { %970 = vst [vmem:[#allocation3] sm:$0xc0] %v966_v16 }
 0x3b0   : > { %v980_v17 = vpop.permute.xlu1 %979  ;;  %v978_v18 = vpop.permute.xlu0 %977  ;;  %v995_v31 = vld [vmem:[#allocation3] sm:$0xff] }
 0x3b1   : > { %v984_v19 = vsel %vm464_vm10, %v980_v17, %v982_v4  ;;  %v983_v20 = vsel %vm464_vm10, %v978_v18, %v980_v17 }
 0x3b2   : > { %v988_v21 = vsel %vm1533_vm5, %v984_v19, 0.0  ;;  %v987_v22 = vsel %vm1529_vm4, %v983_v20, 0.0 }
 0x3b3   : > { %990 = vst [vmem:[#allocation3 + $0x20] sm:$0x3] %v988_v21 }
 0x3b4   : > { %989 = vst [vmem:[#allocation3 + $0x18] sm:$0x3] %v987_v22 }
 0x3b8   : > { %v807_v23 = vpop.permute.xlu1 %806  ;;  %v960_v24 = vpop.permute.xlu0 %959 }
 0x3b9   : > { %v812_v25 = vsel %vm282_vm0, %v807_v23, %v1702_v27  ;;  %v965_v26 = vsel %vm445_vm12, %v960_v24, %v962_v14  ;;  %v993_v27 = vld [vmem:[#allocation3 + $0x10] sm:$0xff] }
 0x3ba   : > { %v816_v28 = vsel %vm1546_vm7, %v812_v25, 0.0  ;;  %969 = vst [vmem:[#allocation3 + $0x8] sm:$0xc0] %v965_v26  ;;  %v997_v29 = vld [vmem:[#allocation3 + $0x20] sm:$0x3] }
 0x3bb   : > { %818 = vst [vmem:[#allocation3 + $0x28] sm:$0x3] %v816_v28  ;;  %v996_v30 = vld [vmem:[#allocation3 + $0x18] sm:$0x3]  ;;  %1387 = vmatpush.msk.msrb.mxu1 %vm484_vm11, %v997_v29 }
 0x3bc   : > { %1385 = vmatpush.msk.msrb.mxu0 %vm484_vm11, %v996_v30 }
 0x3bd   : > { %1041 = vmatpush.msrb.mxu1 %v995_v31 }
 0x3bf   : > { %1042 = vmatpush.msrb.mxu1 %v993_v27 }
 0x3c0   : > { %1388 = vmatmul.msk.f32.vlgmr.msrb.gmra.mxu1 %vm480_vm13, %v991_v32 }
 0x3c1   : > { %v994_v33 = vld [vmem:[#allocation3 + $0x8] sm:$0xff] }
 0x3c2   : > { %1021 = vmatpush.msrb.mxu0 %v994_v33  ;;  %v992_v35 = vld [vmem:[#allocation3 + $0x28] sm:$0xff] }
 0x3c4   : > { %1022 = vmatpush.msrb.mxu0 %v992_v35 }
 0x3c5   : > { %1386 = vmatmul.msk.f32.vlgmr.msrb.gmra.mxu0 %vm480_vm13, %v991_v32 }
 0x43d   : > { %v1044_v36 = vpop.f32.mrf.mxu1 }
 0x43e   : > { %v1048_v37 = vmax.f32 %v1044_v36, 0.0 }
 0x440   : > { %v1051_v38 = vrot.slane %v1048_v37, 6 }
 0x442   : > { %v1024_v34 = vpop.f32.mrf.mxu0 }
 0x443   : > { %v1047_v39 = vmax.f32 %v1024_v34, 0.0 }
 0x445   : > { %v1052_v40 = vsel %vm484_vm11, %v1047_v39, %v1051_v38 }
 0x446   : > { %1054 = vst [vmem:[#allocation2 + $0x2] sm:$0xf] %v1052_v40 }
 0x44d   : > { %v1055_v41 = vld [vmem:[#allocation2] sm:$0x3f] }
 0x44e   : > { %1057 = vst [vmem:[#allocation1] ss:$4 sm:$0xff] %v1055_v41  ;;  %v1075_v47 = vld [vmem:[#allocation2] sm:$0x3f] }
 0x44f   : > { %v1094_v45 = vld [vmem:[#allocation2] sm:$0x3f] }
 0x450   : > { %v1120_v56 = vld [vmem:[#allocation2] sm:$0x3f] }
 0x451   : > { %v1146_v60 = vld [vmem:[#allocation2 + $0x2] sm:$0xf] }
 0x452   : > { %v1155_v61 = vld [vmem:[#allocation2 + $0x2] sm:$0x3f] }
 0x453   : > { %v1181_v4 = vld [vmem:[#allocation2 + $0x2] sm:$0x3f] }
 0x454   : > { %v1207_v9 = vld [vmem:[#allocation2 + $0x2] sm:$0x3f] }
 0x455   : > { %v1754_v42 = vld.sshfl [vmem:[#allocation1] sm:$0xff pattern:$0x73625140]  ;;  %v1059_v43 = vld.sshfl [vmem:[#allocation1 + $0x8] sm:$0xff pattern:$0x73625140] }
 0x456   : > { %v1060_v46 = vld.sshfl [vmem:[#allocation1 + $0x10] sm:$0xff pattern:$0x73625140]  ;;  %1063 = vrot.lane.b32.xlu0 %v1059_v43, %s1431_s24  ;;  %v1226_v12 = vld [vmem:[#allocation2 + $0x2] sm:$0x3f] }
 0x457   : > { %1078 = vst [vmem:[#allocation1 + $0x1] ss:$4 sm:$0xff] %v1075_v47  ;;  %1065 = vrot.lane.b32.xlu1 %v1060_v46, %s1431_s24 }
 0x45e   : > { %v1079_v48 = vld.sshfl [vmem:[#allocation1] sm:$0xff pattern:$0x73625140]  ;;  %v1080_v49 = vld.sshfl [vmem:[#allocation1 + $0x8] sm:$0xff pattern:$0x73625140] }
 0x45f   : > { %v1081_v50 = vld.sshfl [vmem:[#allocation1 + $0x10] sm:$0xff pattern:$0x73625140]  ;;  %1084 = vrot.lane.b32.xlu1 %v1080_v49, %s1432_s25 }
 0x460   : > { %1096 = vst [vmem:[#allocation1] ss:$4 sm:$0xff] %v1094_v45  ;;  %1086 = vrot.lane.b32.xlu2 %v1081_v50, %s1432_s25 }
 0x467   : > { %v1097_v51 = vld.sshfl [vmem:[#allocation1] sm:$0xff pattern:$0x73625140]  ;;  %v1098_v53 = vld.sshfl [vmem:[#allocation1 + $0x8] sm:$0xff pattern:$0x73625140] }
 0x468   : > { %v1099_v55 = vld.sshfl [vmem:[#allocation1 + $0x10] sm:$0xff pattern:$0x73625140]  ;;  %1102 = vrot.lane.b32.xlu0 %v1098_v53, %s1433_s26  ;;  %1100 = vrot.lane.b32.xlu2 %v1097_v51, %s1433_s26 }
 0x469   : > { %1122 = vst [vmem:[#allocation1] ss:$4 sm:$0xff] %v1120_v56  ;;  %1104 = vrot.lane.b32.xlu1 %v1099_v55, %s1433_s26 }
 0x470   : > { %v1123_v57 = vld.sshfl [vmem:[#allocation1] sm:$0xff pattern:$0x73625140]  ;;  %v1124_v58 = vld.sshfl [vmem:[#allocation1 + $0x8] sm:$0xff pattern:$0x73625140] }
 0x471   : > { %v1125_v59 = vld.sshfl [vmem:[#allocation1 + $0x10] sm:$0xff pattern:$0x73625140]  ;;  %1128 = vrot.lane.b32.xlu2 %v1124_v58, %s1434_s27 }
 0x472   : > { %1148 = vst [vmem:[#allocation1] ss:$4 sm:$0xff] %v1146_v60  ;;  %1130 = vrot.lane.b32.xlu0 %v1125_v59, %s1434_s27 }
 0x479   : > { %v1149_v62 = vld.sshfl [vmem:[#allocation1] sm:$0xff pattern:$0x73625140]  ;;  %v1150_v63 = vld.sshfl [vmem:[#allocation1 + $0x8] sm:$0xff pattern:$0x73625140] }
 0x47a   : > { %1157 = vst [vmem:[#allocation1] ss:$4 sm:$0xff] %v1155_v61  ;;  %1126 = vrot.lane.b32.xlu0 %v1123_v57, %s1434_s27 }
 0x47b   : > { %1153 = vst [vmem:[#allocation3 + $0x8] sm:$0x3] %v1149_v62 }
 0x47c   : > { %1154 = vst [vmem:[#allocation3] sm:$0x3] %v1150_v63 }
 0x481   : > { %v1158_v0 = vld.sshfl [vmem:[#allocation1] sm:$0xff pattern:$0x73625140]  ;;  %v1159_v2 = vld.sshfl [vmem:[#allocation1 + $0x8] sm:$0xff pattern:$0x73625140] }
 0x482   : > { %v1160_v3 = vld.sshfl [vmem:[#allocation1 + $0x10] sm:$0xff pattern:$0x73625140]  ;;  %1163 = vrot.lane.b32.xlu0 %v1159_v2, %s1435_s28 }
 0x483   : > { %1183 = vst [vmem:[#allocation1] ss:$4 sm:$0xff] %v1181_v4  ;;  %1165 = vrot.lane.b32.xlu1 %v1160_v3, %s1435_s28 }
 0x48a   : > { %v1184_v6 = vld.sshfl [vmem:[#allocation1] sm:$0xff pattern:$0x73625140]  ;;  %v1185_v7 = vld.sshfl [vmem:[#allocation1 + $0x8] sm:$0xff pattern:$0x73625140] }
 0x48b   : > { %v1186_v8 = vld.sshfl [vmem:[#allocation1 + $0x10] sm:$0xff pattern:$0x73625140]  ;;  %1161 = vrot.lane.b32.xlu1 %v1158_v0, %s1435_s28  ;;  %1189 = vrot.lane.b32.xlu2 %v1185_v7, %s1436_s29 }
 0x48c   : > { %1210 = vst [vmem:[#allocation1 + $0x3] ss:$4 sm:$0xff] %v1207_v9  ;;  %1191 = vrot.lane.b32.xlu0 %v1186_v8, %s1436_s29 }
 0x493   : > { %v1211_v10 = vld.sshfl [vmem:[#allocation1] sm:$0xff pattern:$0x73625140]  ;;  %1187 = vrot.lane.b32.xlu2 %v1184_v6, %s1436_s29  ;;  %v1212_v11 = vld.sshfl [vmem:[#allocation1 + $0x8] sm:$0xff pattern:$0x73625140] }
 0x494   : > { %1216 = vrot.lane.b32.xlu1 %v1212_v11, %s1437_s30  ;;  %v1213_v13 = vld.sshfl [vmem:[#allocation1 + $0x10] sm:$0xff pattern:$0x73625140] }
 0x495   : > { %1228 = vst [vmem:[#allocation1] ss:$4 sm:$0xff] %v1226_v12 }
 0x49b   : > { %1218 = vrot.lane.b32.xlu2 %v1213_v13, %s1437_s30 }
 0x49c   : > { %v1230_v14 = vld.sshfl [vmem:[#allocation1 + $0x8] sm:$0xff pattern:$0x73625140]  ;;  %v1229_v15 = vld.sshfl [vmem:[#allocation1] sm:$0xff pattern:$0x73625140] }
 0x49d   : > { %1234 = vrot.lane.b32.xlu1 %v1230_v14, %s1438_s6  ;;  %1232 = vrot.lane.b32.xlu0 %v1229_v15, %s1438_s6  ;;  %v1231_v16 = vld.sshfl [vmem:[#allocation1 + $0x10] sm:$0xff pattern:$0x73625140] }
 0x4a3   : > { %1236 = vrot.lane.b32.xlu2 %v1231_v16, %s1438_s6 }
 0x4a5   : > { %1061 = vrot.lane.b32.xlu1 %v1754_v42, %s1431_s24  ;;  %1214 = vrot.lane.b32.xlu0 %v1211_v10, %s1437_s30 }
 0x4ab   : > { %1082 = vrot.lane.b32.xlu2 %v1079_v48, %s1432_s25 }
 0x4ba   : > { %v1087_v18 = vpop.permute.xlu2 %1086 }
 0x4c2   : > { %v1101_v24 = vpop.permute.xlu2 %1100 }
 0x4c8   : > { %v1781_v17 = vpop.permute.xlu0 %1063 }
 0x4c9   : > { %v1066_v19 = vpop.permute.xlu1 %1065 }
 0x4ca   : > { %v1068_v20 = vsel %vm282_vm0, %v1781_v17, %v1066_v19  ;;  %v1246_v19 = vld [vmem:[%s1842_s4] sm:$0x3] }
 0x4cb   : > { %v1072_v21 = vsel %vm1518_vm1, %v1068_v20, 0.0  ;;  %v1129_v31 = vpop.permute.xlu2 %1128 }
 0x4cc   : > { %1074 = vst [vmem:[#allocation3 + $0x10] sm:$0x3] %v1072_v21 }
 0x4d1   : > { %v1085_v22 = vpop.permute.xlu1 %1084 }
 0x4d2   : > { %v1089_v23 = vsel %vm304_vm2, %v1085_v22, %v1087_v18 }
 0x4d3   : > { %1093 = vst [vmem:[#allocation3 + $0x10] sm:$0xc] %v1089_v23 }
 0x4da   : > { %v1103_v25 = vpop.permute.xlu0 %1102 }
 0x4db   : > { %v1105_v26 = vpop.permute.xlu1 %1104  ;;  %v1106_v28 = vsel %vm327_vm3, %v1101_v24, %v1103_v25 }
 0x4dc   : > { %v1107_v29 = vsel %vm327_vm3, %v1103_v25, %v1105_v26  ;;  %v1110_v30 = vsel %vm1529_vm4, %v1106_v28, 0.0 }
 0x4dd   : > { %v1111_v32 = vsel %vm1533_vm5, %v1107_v29, 0.0  ;;  %v1114_v27 = vrot.slane %v1110_v30, 4 }
 0x4de   : > { %v1115_v33 = vrot.slane %v1111_v32, 4 }
 0x4df   : > { %1118 = vst [vmem:[#allocation3 + $0x28] sm:$0x30] %v1114_v27 }
 0x4e0   : > { %1119 = vst [vmem:[#allocation3 + $0x10] sm:$0x30] %v1115_v33 }
 0x4e4   : > { %v1131_v35 = vpop.permute.xlu0 %1130 }
 0x4e5   : > { %v1133_v36 = vsel %vm354_vm6, %v1129_v31, %v1131_v35  ;;  %v1190_v37 = vpop.permute.xlu2 %1189 }
 0x4e6   : > { %v1137_v38 = vsel %vm1518_vm1, %v1133_v36, 0.0 }
 0x4e7   : > { %v1141_v34 = vrot.slane %v1137_v38, 2 }
 0x4e9   : > { %1145 = vst [vmem:[#allocation3 + $0x10] sm:$0xc0] %v1141_v34 }
 0x4ec   : > { %v1127_v39 = vpop.permute.xlu0 %1126 }
 0x4ed   : > { %v1132_v40 = vsel %vm354_vm6, %v1127_v39, %v1129_v31  ;;  %v1188_v41 = vpop.permute.xlu2 %1187 }
 0x4ee   : > { %v1136_v42 = vsel %vm1546_vm7, %v1132_v40, 0.0  ;;  %v1193_v43 = vsel %vm417_vm9, %v1188_v41, %v1190_v37 }
 0x4ef   : > { %v1140_v46 = vrot.slane %v1136_v42, 2  ;;  %v1197_v47 = vsel %vm1546_vm7, %v1193_v43, 0.0 }
 0x4f0   : > { %v1201_v48 = vrot.slane %v1197_v47, 4 }
 0x4f1   : > { %1144 = vst [vmem:[#allocation3 + $0x28] sm:$0xc0] %v1140_v46 }
 0x4f2   : > { %1205 = vst [vmem:[#allocation3 + $0x8] sm:$0x30] %v1201_v48 }
 0x4f4   : > { %v1164_v49 = vpop.permute.xlu0 %1163 }
 0x4f5   : > { %v1166_v50 = vpop.permute.xlu1 %1165  ;;  %v1219_v45 = vpop.permute.xlu2 %1218 }
 0x4f6   : > { %v1168_v51 = vsel %vm390_vm8, %v1164_v49, %v1166_v50 }
 0x4f7   : > { %v1172_v53 = vsel %vm1533_vm5, %v1168_v51, 0.0 }
 0x4f8   : > { %v1176_v55 = vrot.slane %v1172_v53, 6 }
 0x4fa   : > { %1180 = vst [vmem:[#allocation3] sm:$0xc] %v1176_v55 }
 0x4fd   : > { %v1162_v56 = vpop.permute.xlu1 %1161  ;;  %v1237_v57 = vpop.permute.xlu2 %1236 }
 0x4fe   : > { %v1167_v58 = vsel %vm390_vm8, %v1162_v56, %v1164_v49  ;;  %v1192_v59 = vpop.permute.xlu0 %1191 }
 0x4ff   : > { %v1171_v60 = vsel %vm1529_vm4, %v1167_v58, 0.0  ;;  %v1194_v61 = vsel %vm417_vm9, %v1190_v37, %v1192_v59 }
 0x500   : > { %v1175_v62 = vrot.slane %v1171_v60, 6  ;;  %v1198_v63 = vsel %vm1518_vm1, %v1194_v61, 0.0 }
 0x501   : > { %v1202_v0 = vrot.slane %v1198_v63, 4 }
 0x502   : > { %1179 = vst [vmem:[#allocation3 + $0x8] sm:$0xc] %v1175_v62 }
 0x503   : > { %1206 = vst [vmem:[#allocation3] sm:$0x30] %v1202_v0 }
 0x505   : > { %v1083_v2 = vpop.permute.xlu2 %1082 }
 0x506   : > { %v1217_v3 = vpop.permute.xlu1 %1216  ;;  %v1088_v4 = vsel %vm304_vm2, %v1083_v2, %v1085_v22 }
 0x507   : > { %v1221_v6 = vsel %vm445_vm12, %v1217_v3, %v1219_v45  ;;  %1092 = vst [vmem:[#allocation3 + $0x28] sm:$0xc] %v1088_v4 }
 0x508   : > { %1225 = vst [vmem:[#allocation3] sm:$0xc0] %v1221_v6 }
 0x50f   : > { %v1235_v7 = vpop.permute.xlu1 %1234  ;;  %v1233_v8 = vpop.permute.xlu0 %1232  ;;  %v1250_v52 = vld [vmem:[#allocation3] sm:$0xff] }
 0x510   : > { %v1239_v9 = vsel %vm464_vm10, %v1235_v7, %v1237_v57  ;;  %v1238_v10 = vsel %vm464_vm10, %v1233_v8, %v1235_v7 }
 0x511   : > { %v1243_v44 = vsel %vm1533_vm5, %v1239_v9, 0.0  ;;  %v1242_v11 = vsel %vm1529_vm4, %v1238_v10, 0.0 }
 0x512   : > { %1245 = vst [vmem:[#allocation3 + $0x20] sm:$0x3] %v1243_v44 }
 0x513   : > { %1244 = vst [vmem:[#allocation3 + $0x18] sm:$0x3] %v1242_v11 }
 0x517   : > { %v1062_v12 = vpop.permute.xlu1 %1061  ;;  %v1215_v13 = vpop.permute.xlu0 %1214 }
 0x518   : > { %v1067_v14 = vsel %vm282_vm0, %v1062_v12, %v1781_v17  ;;  %v1220_v15 = vsel %vm445_vm12, %v1215_v13, %v1217_v3  ;;  %v1248_v17 = vld [vmem:[#allocation3 + $0x10] sm:$0xff] }
 0x519   : > { %v1071_v16 = vsel %vm1546_vm7, %v1067_v14, 0.0  ;;  %1224 = vst [vmem:[#allocation3 + $0x8] sm:$0xc0] %v1220_v15  ;;  %v1252_v18 = vld [vmem:[#allocation3 + $0x20] sm:$0x3] }
 0x51a   : > { %1073 = vst [vmem:[#allocation3 + $0x28] sm:$0x3] %v1071_v16  ;;  %v1251_v54 = vld [vmem:[#allocation3 + $0x18] sm:$0x3]  ;;  %1391 = vmatpush.msk.msrb.mxu3 %vm484_vm11, %v1252_v18 }
 0x51b   : > { %1389 = vmatpush.msk.msrb.mxu2 %vm484_vm11, %v1251_v54 }
 0x51c   : > { %1296 = vmatpush.msrb.mxu3 %v1250_v52 }
 0x51e   : > { %1297 = vmatpush.msrb.mxu3 %v1248_v17 }
 0x51f   : > { %1392 = vmatmul.msk.f32.vlgmr.msrb.gmra.mxu3 %vm480_vm13, %v1246_v19 }
 0x520   : > { %v1249_v5 = vld [vmem:[#allocation3 + $0x8] sm:$0xff] }
 0x521   : > { %1276 = vmatpush.msrb.mxu2 %v1249_v5  ;;  %v1247_v20 = vld [vmem:[#allocation3 + $0x28] sm:$0xff] }
 0x523   : > { %1277 = vmatpush.msrb.mxu2 %v1247_v20 }
 0x524   : > { %1390 = vmatmul.msk.f32.vlgmr.msrb.gmra.mxu2 %vm480_vm13, %v1246_v19 }
 0x5a2   : > { %v1299_v21 = vpop.f32.mrf.mxu3 }
 0x5a3   : > { %1418 = vtanh.f32 %v1299_v21 }
 0x5a7   : > { %v1279_v22 = vpop.f32.mrf.mxu2 }
 0x5a8   : > { %1420 = vtanh.f32 %v1279_v22 }
 0x5a9   : > { %v1419_v23 = vpop.eup %1418 }
 0x5aa   : > { %v1306_v24 = vrot.slane %v1419_v23, 4 }
 0x5ae   : > { %v1421_v25 = vpop.eup %1420 }
 0x5af   : > { %v1307_v26 = vsel %vm791_vm14, %v1421_v25, %v1306_v24 }
 0x5b0   : > { %v1308_v28 = vrot.slane %v1307_v26, 6 }
 0x5b2   : > { %v1310_v29 = vadd.f32 %v1308_v28, %v1488_v1 }
 0x5b4   : > { %1312 = vst [vmem:[%s1671_s13] sm:$0xcc] %v1310_v29 }
 0x5b5 PF: > { %s15_s18 = sadd.s32 1, %s1428_s18  }
 0x5b6   : > { %p12_p4 = scmp.ge.s32.totalorder %s15_s18, 4  }
 0x5b8   :  { %14 = sbr.rel (!%p12_p4) target bundleno = 1 (0x1), region = 79 }

</bundles_post_ra>
